<compile_context>
chip_gen: v7x
topology: tpu7x:2x2x1
jax: 0.10.0
libtpu: 0.0.40
codegen_flags: <defaults>
</compile_context>

<pallas_src>
import functools
import math

import jax
import jax.numpy as jnp
from jax import lax
from jax.experimental import pallas as pl
from jax.experimental.pallas import tpu as pltpu

NUM_HEADS = 12


# ------------------------- fused QKV + attention kernel -------------------------
def _fused_attn_kernel(*refs, scale, num_heads, head_size, has_mask):
    # refs (has_mask=True):  x, c, wq, bq, wkv, bkv, mask, out
    # refs (has_mask=False): x, c, wq, bq, wkv, bkv, out
    if has_mask:
        x_ref, c_ref, wq_ref, bq_ref, wkv_ref, bkv_ref, m_ref, o_ref = refs
    else:
        x_ref, c_ref, wq_ref, bq_ref, wkv_ref, bkv_ref, o_ref = refs
        m_ref = None

    D = num_heads * head_size

    # ---- fused projections (lane-dense MXU matmuls, f32 accumulation) ----
    # TODO(synk): on v6e/v7x cast x/c/wq/wkv to bf16 (keep f32 accumulate) for
    # ~2x MXU throughput at production sizes; kept f32 here for exact parity.
    x = x_ref[0].astype(jnp.float32)                        # (Sq, Dq)
    c = c_ref[0].astype(jnp.float32)                        # (Sk, Dc)
    Sq = x.shape[0]

    q = jnp.dot(x, wq_ref[...].astype(jnp.float32),
                preferred_element_type=jnp.float32) + bq_ref[...].astype(jnp.float32)
    kv = jnp.dot(c, wkv_ref[...].astype(jnp.float32),
                 preferred_element_type=jnp.float32) + bkv_ref[...].astype(jnp.float32)

    # ---- per-head scores (static head unroll), stacked along sublanes ----
    scores = []
    for h in range(num_heads):
        lo = h * head_size
        hi = lo + head_size
        # scores_h = q_h @ k_h^T  (trans_b contraction, stays on the MXU)
        s = lax.dot_general(q[:, lo:hi], kv[:, lo:hi],
                            (((1,), (1,)), ((), ())),
                            preferred_element_type=jnp.float32)
        scores.append(s)
    s_all = jnp.concatenate(scores, axis=0) * scale          # (H*Sq, Sk)
    if has_mask:
        m = m_ref[0].astype(jnp.float32)                     # (Sq, Sk)
        s_all = s_all + jnp.concatenate([m] * num_heads, axis=0)

    # ---- single softmax over all heads (one max/exp/sum/reciprocal chain) ----
    s_all = s_all - jnp.max(s_all, axis=-1, keepdims=True)
    p_all = jnp.exp(s_all)
    p_all = p_all * pl.reciprocal(jnp.sum(p_all, axis=-1, keepdims=True), approx=True)
    # Dropout(p=0.1) on the attention probabilities is identity in eval mode.
    # TODO(synk): training-mode dropout (pltpu.prng_seed + stateful_bernoulli) not implemented.

    # ---- per-head PV matmuls, lane-dense head merge ----
    head_outs = []
    for h in range(num_heads):
        lo = h * head_size
        hi = lo + head_size
        p_h = p_all[h * Sq:(h + 1) * Sq, :]                  # sublane-aligned slice
        head_outs.append(jnp.dot(p_h, kv[:, D + lo:D + hi],
                                 preferred_element_type=jnp.float32))
    out = jnp.concatenate(head_outs, axis=-1)                # (Sq, D) lane-dense
    o_ref[0] = out.astype(o_ref.dtype)


def pallas_bert_attention(hidden, context, wq, bq, wkv, bkv, mask=None, *,
                          num_heads, head_size):
    """hidden: [B,Sq,Dq], context: [B,Sk,Dc], wq: [Dq,D], wkv: [Dc,2D],
    mask: optional [B,Sq,Sk] additive mask -> [B,Sq,D]."""
    B, Sq, Dq = hidden.shape
    _, Sk, Dc = context.shape
    D = num_heads * head_size
    scale = 1.0 / math.sqrt(head_size)
    has_mask = mask is not None

    kernel = functools.partial(_fused_attn_kernel, scale=scale,
                               num_heads=num_heads, head_size=head_size,
                               has_mask=has_mask)

    in_specs = [
        pl.BlockSpec((1, Sq, Dq), lambda b: (b, 0, 0)),      # hidden_states
        pl.BlockSpec((1, Sk, Dc), lambda b: (b, 0, 0)),      # context
        pl.BlockSpec((Dq, D), lambda b: (0, 0)),             # Wq (stays resident)
        pl.BlockSpec((1, D), lambda b: (0, 0)),              # bq
        pl.BlockSpec((Dc, 2 * D), lambda b: (0, 0)),         # Wk|Wv fused
        pl.BlockSpec((1, 2 * D), lambda b: (0, 0)),          # bk|bv fused
    ]
    args = [hidden, context, wq, bq.reshape(1, D), wkv, bkv.reshape(1, 2 * D)]
    if has_mask:
        in_specs.append(pl.BlockSpec((1, Sq, Sk), lambda b: (b, 0, 0)))
        args.append(mask)

    # TODO(synk): at production BERT shapes (S=512, D=768, larger B) tile Sq and
    # Sk flash-style and set pltpu.CompilerParams(vmem_limit_bytes=...) so the
    # full-[Sq,Sk] score block does not blow v7x's smaller VMEM.
    return pl.pallas_call(
        kernel,
        out_shape=jax.ShapeDtypeStruct((B, Sq, D), hidden.dtype),
        grid_spec=pltpu.PrefetchScalarGridSpec(
            num_scalar_prefetch=0,
            grid=(B,),
            in_specs=in_specs,
            out_specs=pl.BlockSpec((1, Sq, D), lambda b: (b, 0, 0)),
        ),
        compiler_params=pltpu.CompilerParams(dimension_semantics=("parallel",)),
    )(*args)


# ------------------------------- module wrapper --------------------------------
class BertOutAttentionPallas:
    def __init__(self, size, ctx_dim=None, key=None):
        if size % NUM_HEADS != 0:
            raise ValueError(
                "The hidden size (%d) is not a multiple of the number of "
                "attention heads (%d)" % (size, NUM_HEADS)
            )
        self.num_attention_heads = NUM_HEADS
        self.attention_head_size = size // NUM_HEADS
        self.all_head_size = self.num_attention_heads * self.attention_head_size
        if ctx_dim is None:
            ctx_dim = size
        self.size = size
        self.ctx_dim = ctx_dim

        if key is None:
            key = jax.random.PRNGKey(0)
        keys = jax.random.split(key, 6)
        std = 0.02
        # weights stored as [Din, Dout] so y = x @ W + b
        self.wq = std * jax.random.normal(keys[0], (size, self.all_head_size), jnp.float32)
        self.bq = std * jax.random.normal(keys[1], (self.all_head_size,), jnp.float32)
        self.wk = std * jax.random.normal(keys[2], (ctx_dim, self.all_head_size), jnp.float32)
        self.bk = std * jax.random.normal(keys[3], (self.all_head_size,), jnp.float32)
        self.wv = std * jax.random.normal(keys[4], (ctx_dim, self.all_head_size), jnp.float32)
        self.bv = std * jax.random.normal(keys[5], (self.all_head_size,), jnp.float32)

        # K and V projections consume the same input -> fuse into one matmul.
        self.wkv = jnp.concatenate([self.wk, self.wv], axis=1)   # [ctx_dim, 2D]
        self.bkv = jnp.concatenate([self.bk, self.bv], axis=0)   # [2D]

    def __call__(self, hidden_states, context, attention_mask=None):
        B, Sq, _ = hidden_states.shape
        Sk = context.shape[1]
        mask = None
        if attention_mask is not None:
            # BERT additive mask, broadcast over heads -> [B, Sq, Sk]
            mask = jnp.broadcast_to(attention_mask, (B, 1, Sq, Sk))[:, 0]
            mask = mask.astype(jnp.float32)
        return pallas_bert_attention(
            hidden_states, context, self.wq, self.bq, self.wkv, self.bkv, mask,
            num_heads=self.num_attention_heads,
            head_size=self.attention_head_size,
        )


# ----------------------------------- main --------------------------------------
def _reference(mod, hidden_states, context, attention_mask):
    """Plain-JAX reference for correctness check."""
    q = hidden_states @ mod.wq + mod.bq
    k = context @ mod.wk + mod.bk
    v = context @ mod.wv + mod.bv
    B, Sq, _ = q.shape
    Sk = k.shape[1]
    H, d = mod.num_attention_heads, mod.attention_head_size
    qh = jnp.transpose(q.reshape(B, Sq, H, d), (0, 2, 1, 3))
    kh = jnp.transpose(k.reshape(B, Sk, H, d), (0, 2, 1, 3))
    vh = jnp.transpose(v.reshape(B, Sk, H, d), (0, 2, 1, 3))
    s = jnp.einsum("bhqd,bhkd->bhqk", qh, kh) / math.sqrt(d)
    if attention_mask is not None:
        s = s + attention_mask
    p = jax.nn.softmax(s, axis=-1)
    o = jnp.einsum("bhqk,bhkd->bhqd", p, vh)
    return jnp.transpose(o, (0, 2, 1, 3)).reshape(B, Sq, H * d)


if __name__ == "__main__":
    B, Sq, Sk = 2, 8, 10
    SIZE = 96          # 12 heads * head_size 8
    CTX_DIM = 96

    root = jax.random.PRNGKey(0)
    k_h, k_c, k_m, k_p = jax.random.split(root, 4)

    hidden_states = jax.random.normal(k_h, (B, Sq, SIZE), jnp.float32)
    context = jax.random.normal(k_c, (B, Sk, CTX_DIM), jnp.float32)
    # additive attention mask, broadcast over heads (BERT convention)
    attention_mask = -10000.0 * (
        jax.random.uniform(k_m, (B, 1, Sq, Sk)) < 0.2
    ).astype(jnp.float32)

    mod = BertOutAttentionPallas(SIZE, CTX_DIM, key=k_p)

    # masked cross-attention
    out = jax.block_until_ready(mod(hidden_states, context, attention_mask))
    ref = _reference(mod, hidden_states, context, attention_mask)
    assert out.shape == (B, Sq, SIZE), out.shape
    assert jnp.allclose(out, ref, atol=2e-3, rtol=2e-3), float(jnp.max(jnp.abs(out - ref)))

    # mask=None path (no mask DMA at all)
    out_nm = jax.block_until_ready(mod(hidden_states, context, None))
    ref_nm = _reference(mod, hidden_states, context, None)
    assert jnp.allclose(out_nm, ref_nm, atol=2e-3, rtol=2e-3), float(
        jnp.max(jnp.abs(out_nm - ref_nm))
    )

    print("KERNEL_OK")
</pallas_src>

<mosaic_0001>
module attributes {stable_mosaic.version = 11 : i64} {
  func.func @_fused_attn_kernel(%arg0: i32, %arg1: memref<1x8x96xf32, #tpu.memory_space<vmem>>, %arg2: memref<1x10x96xf32, #tpu.memory_space<vmem>>, %arg3: memref<96x96xf32, #tpu.memory_space<vmem>>, %arg4: memref<1x96xf32, #tpu.memory_space<vmem>>, %arg5: memref<96x192xf32, #tpu.memory_space<vmem>>, %arg6: memref<1x192xf32, #tpu.memory_space<vmem>>, %arg7: memref<1x8x10xf32, #tpu.memory_space<vmem>>, %arg8: memref<1x8x96xf32, #tpu.memory_space<vmem>>) attributes {dimension_semantics = [#tpu.dimension_semantics<parallel>], iteration_bounds = array<i64: 2>, scalar_prefetch = 0 : i64, scratch_operands = 0 : i64, tpu.core_type = #tpu.core_type<tc>, window_params = [{transform_indices = @transform_0, window_bounds = array<i64: 1, 8, 96>}, {transform_indices = @transform_1, window_bounds = array<i64: 1, 10, 96>}, {pipeline_mode = #tpu.pipeline_mode<synchronous>, transform_indices = @transform_2, window_bounds = array<i64: 96, 96>}, {pipeline_mode = #tpu.pipeline_mode<synchronous>, transform_indices = @transform_3, window_bounds = array<i64: 1, 96>}, {pipeline_mode = #tpu.pipeline_mode<synchronous>, transform_indices = @transform_4, window_bounds = array<i64: 96, 192>}, {pipeline_mode = #tpu.pipeline_mode<synchronous>, transform_indices = @transform_5, window_bounds = array<i64: 1, 192>}, {transform_indices = @transform_6, window_bounds = array<i64: 1, 8, 10>}, {transform_indices = @transform_7, window_bounds = array<i64: 1, 8, 96>}]} {
    %c0 = arith.constant 0 : index
    %c0_0 = arith.constant 0 : index
    %c0_1 = arith.constant 0 : index
    %0 = vector.load %arg1[%c0, %c0_0, %c0_1] : memref<1x8x96xf32, #tpu.memory_space<vmem>>, vector<1x8x96xf32>
    %1 = vector.shape_cast %0 : vector<1x8x96xf32> to vector<8x96xf32>
    %c0_2 = arith.constant 0 : index
    %c0_3 = arith.constant 0 : index
    %c0_4 = arith.constant 0 : index
    %2 = vector.load %arg2[%c0_2, %c0_3, %c0_4] : memref<1x10x96xf32, #tpu.memory_space<vmem>>, vector<1x10x96xf32>
    %3 = vector.shape_cast %2 : vector<1x10x96xf32> to vector<10x96xf32>
    %c0_5 = arith.constant 0 : index
    %c0_6 = arith.constant 0 : index
    %4 = vector.load %arg3[%c0_5, %c0_6] : memref<96x96xf32, #tpu.memory_space<vmem>>, vector<96x96xf32>
    %cst = arith.constant dense<0.000000e+00> : vector<8x96xf32>
    %5 = tpu.matmul %1, %4, %cst {dimension_numbers = #tpu.dot_dimension_numbers<[1], [0], [0], [1], [0, 0, 1, 1], [], []>} : vector<8x96xf32>, vector<96x96xf32>, vector<8x96xf32> -> vector<8x96xf32>
    %c0_7 = arith.constant 0 : index
    %c0_8 = arith.constant 0 : index
    %6 = vector.load %arg4[%c0_7, %c0_8] : memref<1x96xf32, #tpu.memory_space<vmem>>, vector<1x96xf32>
    %7 = vector.broadcast %6 : vector<1x96xf32> to vector<8x96xf32>
    %8 = arith.addf %5, %7 : vector<8x96xf32>
    %c0_9 = arith.constant 0 : index
    %c0_10 = arith.constant 0 : index
    %9 = vector.load %arg5[%c0_9, %c0_10] : memref<96x192xf32, #tpu.memory_space<vmem>>, vector<96x192xf32>
    %cst_11 = arith.constant dense<0.000000e+00> : vector<10x192xf32>
    %10 = tpu.matmul %3, %9, %cst_11 {dimension_numbers = #tpu.dot_dimension_numbers<[1], [0], [0], [1], [0, 0, 1, 1], [], []>} : vector<10x96xf32>, vector<96x192xf32>, vector<10x192xf32> -> vector<10x192xf32>
    %c0_12 = arith.constant 0 : index
    %c0_13 = arith.constant 0 : index
    %11 = vector.load %arg6[%c0_12, %c0_13] : memref<1x192xf32, #tpu.memory_space<vmem>>, vector<1x192xf32>
    %12 = vector.broadcast %11 : vector<1x192xf32> to vector<10x192xf32>
    %13 = arith.addf %10, %12 : vector<10x192xf32>
    %14 = vector.extract_strided_slice %8 {offsets = [0, 0], sizes = [8, 8], strides = [1, 1]} : vector<8x96xf32> to vector<8x8xf32>
    %15 = vector.extract_strided_slice %13 {offsets = [0, 0], sizes = [10, 8], strides = [1, 1]} : vector<10x192xf32> to vector<10x8xf32>
    %cst_14 = arith.constant dense<0.000000e+00> : vector<8x10xf32>
    %16 = tpu.matmul %14, %15, %cst_14 {dimension_numbers = #tpu.dot_dimension_numbers<[1], [1], [0], [0], [0, 0, 1, 0], [], []>} : vector<8x8xf32>, vector<10x8xf32>, vector<8x10xf32> -> vector<8x10xf32>
    %17 = vector.extract_strided_slice %8 {offsets = [0, 8], sizes = [8, 8], strides = [1, 1]} : vector<8x96xf32> to vector<8x8xf32>
    %18 = vector.extract_strided_slice %13 {offsets = [0, 8], sizes = [10, 8], strides = [1, 1]} : vector<10x192xf32> to vector<10x8xf32>
    %cst_15 = arith.constant dense<0.000000e+00> : vector<8x10xf32>
    %19 = tpu.matmul %17, %18, %cst_15 {dimension_numbers = #tpu.dot_dimension_numbers<[1], [1], [0], [0], [0, 0, 1, 0], [], []>} : vector<8x8xf32>, vector<10x8xf32>, vector<8x10xf32> -> vector<8x10xf32>
    %20 = vector.extract_strided_slice %8 {offsets = [0, 16], sizes = [8, 8], strides = [1, 1]} : vector<8x96xf32> to vector<8x8xf32>
    %21 = vector.extract_strided_slice %13 {offsets = [0, 16], sizes = [10, 8], strides = [1, 1]} : vector<10x192xf32> to vector<10x8xf32>
    %cst_16 = arith.constant dense<0.000000e+00> : vector<8x10xf32>
    %22 = tpu.matmul %20, %21, %cst_16 {dimension_numbers = #tpu.dot_dimension_numbers<[1], [1], [0], [0], [0, 0, 1, 0], [], []>} : vector<8x8xf32>, vector<10x8xf32>, vector<8x10xf32> -> vector<8x10xf32>
    %23 = vector.extract_strided_slice %8 {offsets = [0, 24], sizes = [8, 8], strides = [1, 1]} : vector<8x96xf32> to vector<8x8xf32>
    %24 = vector.extract_strided_slice %13 {offsets = [0, 24], sizes = [10, 8], strides = [1, 1]} : vector<10x192xf32> to vector<10x8xf32>
    %cst_17 = arith.constant dense<0.000000e+00> : vector<8x10xf32>
    %25 = tpu.matmul %23, %24, %cst_17 {dimension_numbers = #tpu.dot_dimension_numbers<[1], [1], [0], [0], [0, 0, 1, 0], [], []>} : vector<8x8xf32>, vector<10x8xf32>, vector<8x10xf32> -> vector<8x10xf32>
    %26 = vector.extract_strided_slice %8 {offsets = [0, 32], sizes = [8, 8], strides = [1, 1]} : vector<8x96xf32> to vector<8x8xf32>
    %27 = vector.extract_strided_slice %13 {offsets = [0, 32], sizes = [10, 8], strides = [1, 1]} : vector<10x192xf32> to vector<10x8xf32>
    %cst_18 = arith.constant dense<0.000000e+00> : vector<8x10xf32>
    %28 = tpu.matmul %26, %27, %cst_18 {dimension_numbers = #tpu.dot_dimension_numbers<[1], [1], [0], [0], [0, 0, 1, 0], [], []>} : vector<8x8xf32>, vector<10x8xf32>, vector<8x10xf32> -> vector<8x10xf32>
    %29 = vector.extract_strided_slice %8 {offsets = [0, 40], sizes = [8, 8], strides = [1, 1]} : vector<8x96xf32> to vector<8x8xf32>
    %30 = vector.extract_strided_slice %13 {offsets = [0, 40], sizes = [10, 8], strides = [1, 1]} : vector<10x192xf32> to vector<10x8xf32>
    %cst_19 = arith.constant dense<0.000000e+00> : vector<8x10xf32>
    %31 = tpu.matmul %29, %30, %cst_19 {dimension_numbers = #tpu.dot_dimension_numbers<[1], [1], [0], [0], [0, 0, 1, 0], [], []>} : vector<8x8xf32>, vector<10x8xf32>, vector<8x10xf32> -> vector<8x10xf32>
    %32 = vector.extract_strided_slice %8 {offsets = [0, 48], sizes = [8, 8], strides = [1, 1]} : vector<8x96xf32> to vector<8x8xf32>
    %33 = vector.extract_strided_slice %13 {offsets = [0, 48], sizes = [10, 8], strides = [1, 1]} : vector<10x192xf32> to vector<10x8xf32>
    %cst_20 = arith.constant dense<0.000000e+00> : vector<8x10xf32>
    %34 = tpu.matmul %32, %33, %cst_20 {dimension_numbers = #tpu.dot_dimension_numbers<[1], [1], [0], [0], [0, 0, 1, 0], [], []>} : vector<8x8xf32>, vector<10x8xf32>, vector<8x10xf32> -> vector<8x10xf32>
    %35 = vector.extract_strided_slice %8 {offsets = [0, 56], sizes = [8, 8], strides = [1, 1]} : vector<8x96xf32> to vector<8x8xf32>
    %36 = vector.extract_strided_slice %13 {offsets = [0, 56], sizes = [10, 8], strides = [1, 1]} : vector<10x192xf32> to vector<10x8xf32>
    %cst_21 = arith.constant dense<0.000000e+00> : vector<8x10xf32>
    %37 = tpu.matmul %35, %36, %cst_21 {dimension_numbers = #tpu.dot_dimension_numbers<[1], [1], [0], [0], [0, 0, 1, 0], [], []>} : vector<8x8xf32>, vector<10x8xf32>, vector<8x10xf32> -> vector<8x10xf32>
    %38 = vector.extract_strided_slice %8 {offsets = [0, 64], sizes = [8, 8], strides = [1, 1]} : vector<8x96xf32> to vector<8x8xf32>
    %39 = vector.extract_strided_slice %13 {offsets = [0, 64], sizes = [10, 8], strides = [1, 1]} : vector<10x192xf32> to vector<10x8xf32>
    %cst_22 = arith.constant dense<0.000000e+00> : vector<8x10xf32>
    %40 = tpu.matmul %38, %39, %cst_22 {dimension_numbers = #tpu.dot_dimension_numbers<[1], [1], [0], [0], [0, 0, 1, 0], [], []>} : vector<8x8xf32>, vector<10x8xf32>, vector<8x10xf32> -> vector<8x10xf32>
    %41 = vector.extract_strided_slice %8 {offsets = [0, 72], sizes = [8, 8], strides = [1, 1]} : vector<8x96xf32> to vector<8x8xf32>
    %42 = vector.extract_strided_slice %13 {offsets = [0, 72], sizes = [10, 8], strides = [1, 1]} : vector<10x192xf32> to vector<10x8xf32>
    %cst_23 = arith.constant dense<0.000000e+00> : vector<8x10xf32>
    %43 = tpu.matmul %41, %42, %cst_23 {dimension_numbers = #tpu.dot_dimension_numbers<[1], [1], [0], [0], [0, 0, 1, 0], [], []>} : vector<8x8xf32>, vector<10x8xf32>, vector<8x10xf32> -> vector<8x10xf32>
    %44 = vector.extract_strided_slice %8 {offsets = [0, 80], sizes = [8, 8], strides = [1, 1]} : vector<8x96xf32> to vector<8x8xf32>
    %45 = vector.extract_strided_slice %13 {offsets = [0, 80], sizes = [10, 8], strides = [1, 1]} : vector<10x192xf32> to vector<10x8xf32>
    %cst_24 = arith.constant dense<0.000000e+00> : vector<8x10xf32>
    %46 = tpu.matmul %44, %45, %cst_24 {dimension_numbers = #tpu.dot_dimension_numbers<[1], [1], [0], [0], [0, 0, 1, 0], [], []>} : vector<8x8xf32>, vector<10x8xf32>, vector<8x10xf32> -> vector<8x10xf32>
    %47 = vector.extract_strided_slice %8 {offsets = [0, 88], sizes = [8, 8], strides = [1, 1]} : vector<8x96xf32> to vector<8x8xf32>
    %48 = vector.extract_strided_slice %13 {offsets = [0, 88], sizes = [10, 8], strides = [1, 1]} : vector<10x192xf32> to vector<10x8xf32>
    %cst_25 = arith.constant dense<0.000000e+00> : vector<8x10xf32>
    %49 = tpu.matmul %47, %48, %cst_25 {dimension_numbers = #tpu.dot_dimension_numbers<[1], [1], [0], [0], [0, 0, 1, 0], [], []>} : vector<8x8xf32>, vector<10x8xf32>, vector<8x10xf32> -> vector<8x10xf32>
    %50 = tpu.concatenate %16, %19, %22, %25, %28, %31, %34, %37, %40, %43, %46, %49 in 0 : vector<8x10xf32>, vector<8x10xf32>, vector<8x10xf32>, vector<8x10xf32>, vector<8x10xf32>, vector<8x10xf32>, vector<8x10xf32>, vector<8x10xf32>, vector<8x10xf32>, vector<8x10xf32>, vector<8x10xf32>, vector<8x10xf32> -> vector<96x10xf32>
    %cst_26 = arith.constant 0.353553385 : f32
    %51 = vector.broadcast %cst_26 : f32 to vector<96x10xf32>
    %52 = arith.mulf %50, %51 : vector<96x10xf32>
    %c0_27 = arith.constant 0 : index
    %c0_28 = arith.constant 0 : index
    %c0_29 = arith.constant 0 : index
    %53 = vector.load %arg7[%c0_27, %c0_28, %c0_29] : memref<1x8x10xf32, #tpu.memory_space<vmem>>, vector<1x8x10xf32>
    %54 = vector.shape_cast %53 : vector<1x8x10xf32> to vector<8x10xf32>
    %55 = tpu.concatenate %54, %54, %54, %54, %54, %54, %54, %54, %54, %54, %54, %54 in 0 : vector<8x10xf32>, vector<8x10xf32>, vector<8x10xf32>, vector<8x10xf32>, vector<8x10xf32>, vector<8x10xf32>, vector<8x10xf32>, vector<8x10xf32>, vector<8x10xf32>, vector<8x10xf32>, vector<8x10xf32>, vector<8x10xf32> -> vector<96x10xf32>
    %56 = arith.addf %52, %55 : vector<96x10xf32>
    %cst_30 = arith.constant dense<0xFF800000> : vector<96xf32>
    %57 = vector.multi_reduction <maximumf>, %56, %cst_30 [1] : vector<96x10xf32> to vector<96xf32>
    %58 = vector.shape_cast %57 : vector<96xf32> to vector<96x1xf32>
    %59 = vector.broadcast %58 : vector<96x1xf32> to vector<96x10xf32>
    %60 = arith.subf %56, %59 : vector<96x10xf32>
    %61 = math.exp %60 : vector<96x10xf32>
    %cst_31 = arith.constant dense<0.000000e+00> : vector<96xf32>
    %62 = vector.multi_reduction <add>, %61, %cst_31 [1] : vector<96x10xf32> to vector<96xf32>
    %63 = vector.shape_cast %62 : vector<96xf32> to vector<96x1xf32>
    %64 = tpu.reciprocal %63 {approx = true} : vector<96x1xf32> -> vector<96x1xf32>
    %65 = vector.broadcast %64 : vector<96x1xf32> to vector<96x10xf32>
    %66 = arith.mulf %61, %65 : vector<96x10xf32>
    %67 = vector.extract_strided_slice %66 {offsets = [0, 0], sizes = [8, 10], strides = [1, 1]} : vector<96x10xf32> to vector<8x10xf32>
    %68 = vector.extract_strided_slice %13 {offsets = [0, 96], sizes = [10, 8], strides = [1, 1]} : vector<10x192xf32> to vector<10x8xf32>
    %cst_32 = arith.constant dense<0.000000e+00> : vector<8x8xf32>
    %69 = tpu.matmul %67, %68, %cst_32 {dimension_numbers = #tpu.dot_dimension_numbers<[1], [0], [0], [1], [0, 0, 1, 1], [], []>} : vector<8x10xf32>, vector<10x8xf32>, vector<8x8xf32> -> vector<8x8xf32>
    %70 = vector.extract_strided_slice %66 {offsets = [8, 0], sizes = [8, 10], strides = [1, 1]} : vector<96x10xf32> to vector<8x10xf32>
    %71 = vector.extract_strided_slice %13 {offsets = [0, 104], sizes = [10, 8], strides = [1, 1]} : vector<10x192xf32> to vector<10x8xf32>
    %cst_33 = arith.constant dense<0.000000e+00> : vector<8x8xf32>
    %72 = tpu.matmul %70, %71, %cst_33 {dimension_numbers = #tpu.dot_dimension_numbers<[1], [0], [0], [1], [0, 0, 1, 1], [], []>} : vector<8x10xf32>, vector<10x8xf32>, vector<8x8xf32> -> vector<8x8xf32>
    %73 = vector.extract_strided_slice %66 {offsets = [16, 0], sizes = [8, 10], strides = [1, 1]} : vector<96x10xf32> to vector<8x10xf32>
    %74 = vector.extract_strided_slice %13 {offsets = [0, 112], sizes = [10, 8], strides = [1, 1]} : vector<10x192xf32> to vector<10x8xf32>
    %cst_34 = arith.constant dense<0.000000e+00> : vector<8x8xf32>
    %75 = tpu.matmul %73, %74, %cst_34 {dimension_numbers = #tpu.dot_dimension_numbers<[1], [0], [0], [1], [0, 0, 1, 1], [], []>} : vector<8x10xf32>, vector<10x8xf32>, vector<8x8xf32> -> vector<8x8xf32>
    %76 = vector.extract_strided_slice %66 {offsets = [24, 0], sizes = [8, 10], strides = [1, 1]} : vector<96x10xf32> to vector<8x10xf32>
    %77 = vector.extract_strided_slice %13 {offsets = [0, 120], sizes = [10, 8], strides = [1, 1]} : vector<10x192xf32> to vector<10x8xf32>
    %cst_35 = arith.constant dense<0.000000e+00> : vector<8x8xf32>
    %78 = tpu.matmul %76, %77, %cst_35 {dimension_numbers = #tpu.dot_dimension_numbers<[1], [0], [0], [1], [0, 0, 1, 1], [], []>} : vector<8x10xf32>, vector<10x8xf32>, vector<8x8xf32> -> vector<8x8xf32>
    %79 = vector.extract_strided_slice %66 {offsets = [32, 0], sizes = [8, 10], strides = [1, 1]} : vector<96x10xf32> to vector<8x10xf32>
    %80 = vector.extract_strided_slice %13 {offsets = [0, 128], sizes = [10, 8], strides = [1, 1]} : vector<10x192xf32> to vector<10x8xf32>
    %cst_36 = arith.constant dense<0.000000e+00> : vector<8x8xf32>
    %81 = tpu.matmul %79, %80, %cst_36 {dimension_numbers = #tpu.dot_dimension_numbers<[1], [0], [0], [1], [0, 0, 1, 1], [], []>} : vector<8x10xf32>, vector<10x8xf32>, vector<8x8xf32> -> vector<8x8xf32>
    %82 = vector.extract_strided_slice %66 {offsets = [40, 0], sizes = [8, 10], strides = [1, 1]} : vector<96x10xf32> to vector<8x10xf32>
    %83 = vector.extract_strided_slice %13 {offsets = [0, 136], sizes = [10, 8], strides = [1, 1]} : vector<10x192xf32> to vector<10x8xf32>
    %cst_37 = arith.constant dense<0.000000e+00> : vector<8x8xf32>
    %84 = tpu.matmul %82, %83, %cst_37 {dimension_numbers = #tpu.dot_dimension_numbers<[1], [0], [0], [1], [0, 0, 1, 1], [], []>} : vector<8x10xf32>, vector<10x8xf32>, vector<8x8xf32> -> vector<8x8xf32>
    %85 = vector.extract_strided_slice %66 {offsets = [48, 0], sizes = [8, 10], strides = [1, 1]} : vector<96x10xf32> to vector<8x10xf32>
    %86 = vector.extract_strided_slice %13 {offsets = [0, 144], sizes = [10, 8], strides = [1, 1]} : vector<10x192xf32> to vector<10x8xf32>
    %cst_38 = arith.constant dense<0.000000e+00> : vector<8x8xf32>
    %87 = tpu.matmul %85, %86, %cst_38 {dimension_numbers = #tpu.dot_dimension_numbers<[1], [0], [0], [1], [0, 0, 1, 1], [], []>} : vector<8x10xf32>, vector<10x8xf32>, vector<8x8xf32> -> vector<8x8xf32>
    %88 = vector.extract_strided_slice %66 {offsets = [56, 0], sizes = [8, 10], strides = [1, 1]} : vector<96x10xf32> to vector<8x10xf32>
    %89 = vector.extract_strided_slice %13 {offsets = [0, 152], sizes = [10, 8], strides = [1, 1]} : vector<10x192xf32> to vector<10x8xf32>
    %cst_39 = arith.constant dense<0.000000e+00> : vector<8x8xf32>
    %90 = tpu.matmul %88, %89, %cst_39 {dimension_numbers = #tpu.dot_dimension_numbers<[1], [0], [0], [1], [0, 0, 1, 1], [], []>} : vector<8x10xf32>, vector<10x8xf32>, vector<8x8xf32> -> vector<8x8xf32>
    %91 = vector.extract_strided_slice %66 {offsets = [64, 0], sizes = [8, 10], strides = [1, 1]} : vector<96x10xf32> to vector<8x10xf32>
    %92 = vector.extract_strided_slice %13 {offsets = [0, 160], sizes = [10, 8], strides = [1, 1]} : vector<10x192xf32> to vector<10x8xf32>
    %cst_40 = arith.constant dense<0.000000e+00> : vector<8x8xf32>
    %93 = tpu.matmul %91, %92, %cst_40 {dimension_numbers = #tpu.dot_dimension_numbers<[1], [0], [0], [1], [0, 0, 1, 1], [], []>} : vector<8x10xf32>, vector<10x8xf32>, vector<8x8xf32> -> vector<8x8xf32>
    %94 = vector.extract_strided_slice %66 {offsets = [72, 0], sizes = [8, 10], strides = [1, 1]} : vector<96x10xf32> to vector<8x10xf32>
    %95 = vector.extract_strided_slice %13 {offsets = [0, 168], sizes = [10, 8], strides = [1, 1]} : vector<10x192xf32> to vector<10x8xf32>
    %cst_41 = arith.constant dense<0.000000e+00> : vector<8x8xf32>
    %96 = tpu.matmul %94, %95, %cst_41 {dimension_numbers = #tpu.dot_dimension_numbers<[1], [0], [0], [1], [0, 0, 1, 1], [], []>} : vector<8x10xf32>, vector<10x8xf32>, vector<8x8xf32> -> vector<8x8xf32>
    %97 = vector.extract_strided_slice %66 {offsets = [80, 0], sizes = [8, 10], strides = [1, 1]} : vector<96x10xf32> to vector<8x10xf32>
    %98 = vector.extract_strided_slice %13 {offsets = [0, 176], sizes = [10, 8], strides = [1, 1]} : vector<10x192xf32> to vector<10x8xf32>
    %cst_42 = arith.constant dense<0.000000e+00> : vector<8x8xf32>
    %99 = tpu.matmul %97, %98, %cst_42 {dimension_numbers = #tpu.dot_dimension_numbers<[1], [0], [0], [1], [0, 0, 1, 1], [], []>} : vector<8x10xf32>, vector<10x8xf32>, vector<8x8xf32> -> vector<8x8xf32>
    %100 = vector.extract_strided_slice %66 {offsets = [88, 0], sizes = [8, 10], strides = [1, 1]} : vector<96x10xf32> to vector<8x10xf32>
    %101 = vector.extract_strided_slice %13 {offsets = [0, 184], sizes = [10, 8], strides = [1, 1]} : vector<10x192xf32> to vector<10x8xf32>
    %cst_43 = arith.constant dense<0.000000e+00> : vector<8x8xf32>
    %102 = tpu.matmul %100, %101, %cst_43 {dimension_numbers = #tpu.dot_dimension_numbers<[1], [0], [0], [1], [0, 0, 1, 1], [], []>} : vector<8x10xf32>, vector<10x8xf32>, vector<8x8xf32> -> vector<8x8xf32>
    %103 = tpu.concatenate %69, %72, %75, %78, %81, %84, %87, %90, %93, %96, %99, %102 in 1 : vector<8x8xf32>, vector<8x8xf32>, vector<8x8xf32>, vector<8x8xf32>, vector<8x8xf32>, vector<8x8xf32>, vector<8x8xf32>, vector<8x8xf32>, vector<8x8xf32>, vector<8x8xf32>, vector<8x8xf32>, vector<8x8xf32> -> vector<8x96xf32>
    %c0_44 = arith.constant 0 : index
    %c0_45 = arith.constant 0 : index
    %c0_46 = arith.constant 0 : index
    %104 = vector.load %arg8[%c0_44, %c0_45, %c0_46] : memref<1x8x96xf32, #tpu.memory_space<vmem>>, vector<1x8x96xf32>
    %105 = vector.shape_cast %104 : vector<1x8x96xf32> to vector<8x96xf32>
    %106 = vector.shape_cast %103 : vector<8x96xf32> to vector<1x8x96xf32>
    tpu.vector_store %arg8[%c0_44, %c0_45, %c0_46], %106 {strides = array<i32>} : memref<1x8x96xf32, #tpu.memory_space<vmem>>, vector<1x8x96xf32>,
    return
  }
  func.func @transform_0(%arg0: i32) -> (i32, i32, i32) {
    %c0_i32 = arith.constant 0 : i32
    %c0_i32_0 = arith.constant 0 : i32
    %c0_i32_1 = arith.constant 0 : i32
    return %arg0, %c0_i32, %c0_i32_0 : i32, i32, i32
  }
  func.func @transform_1(%arg0: i32) -> (i32, i32, i32) {
    %c0_i32 = arith.constant 0 : i32
    %c0_i32_0 = arith.constant 0 : i32
    %c0_i32_1 = arith.constant 0 : i32
    return %arg0, %c0_i32, %c0_i32_0 : i32, i32, i32
  }
  func.func @transform_2(%arg0: i32) -> (i32, i32) {
    %c0_i32 = arith.constant 0 : i32
    %c0_i32_0 = arith.constant 0 : i32
    %c0_i32_1 = arith.constant 0 : i32
    return %c0_i32, %c0_i32_0 : i32, i32
  }
  func.func @transform_3(%arg0: i32) -> (i32, i32) {
    %c0_i32 = arith.constant 0 : i32
    %c0_i32_0 = arith.constant 0 : i32
    %c0_i32_1 = arith.constant 0 : i32
    return %c0_i32, %c0_i32_0 : i32, i32
  }
  func.func @transform_4(%arg0: i32) -> (i32, i32) {
    %c0_i32 = arith.constant 0 : i32
    %c0_i32_0 = arith.constant 0 : i32
    %c0_i32_1 = arith.constant 0 : i32
    return %c0_i32, %c0_i32_0 : i32, i32
  }
  func.func @transform_5(%arg0: i32) -> (i32, i32) {
    %c0_i32 = arith.constant 0 : i32
    %c0_i32_0 = arith.constant 0 : i32
    %c0_i32_1 = arith.constant 0 : i32
    return %c0_i32, %c0_i32_0 : i32, i32
  }
  func.func @transform_6(%arg0: i32) -> (i32, i32, i32) {
    %c0_i32 = arith.constant 0 : i32
    %c0_i32_0 = arith.constant 0 : i32
    %c0_i32_1 = arith.constant 0 : i32
    return %arg0, %c0_i32, %c0_i32_0 : i32, i32, i32
  }
  func.func @transform_7(%arg0: i32) -> (i32, i32, i32) {
    %c0_i32 = arith.constant 0 : i32
    %c0_i32_0 = arith.constant 0 : i32
    %c0_i32_1 = arith.constant 0 : i32
    return %arg0, %c0_i32, %c0_i32_0 : i32, i32, i32
  }
}

</mosaic_0001>

<bundles_post_ra>
// kernel: tpu_custom_call.1
= control target key start
LH: loop header
LB: loop body
LE: loop exit
PB: predicated region body
PF: predicated region fallthrough
CT: control target
= control target key end

     0   :  { %12 = vsyncpa [#allocation3], 0  ;;  %s4355_s0 = inlined_call_operand.vmem [shape: f32[2,8,96], index: 0, kind: input, shape index: {}]   ;;  %s4356_s1 = inlined_call_operand.vmem [shape: f32[2,10,96], index: 1, kind: input, shape index: {}]   ;;  %s4357_s2 = inlined_call_operand.hbm [shape: f32[96,96], index: 2, kind: input, shape index: {}]   ;;  %s4358_s3 = inlined_call_operand.vmem [shape: f32[1,96], index: 3, kind: input, shape index: {}]   ;;  %s4359_s4 = inlined_call_operand.hbm [shape: f32[96,192], index: 4, kind: input, shape index: {}]   ;;  %s4360_s5 = inlined_call_operand.vmem [shape: f32[1,192], index: 5, kind: input, shape index: {}]   ;;  %s4361_s6 = inlined_call_operand.vmem [shape: f32[2,8,10], index: 6, kind: input, shape index: {}]   ;;  %s4362_s7 = inlined_call_operand.hbm [shape: f32[2,8,96], index: 7, kind: output, shape index: {}]  }
   0x1   :  { %13 = vsyncpa [#allocation6], 0 }
   0x2   :  { %14 = vsyncpa [#allocation4], 0 }
   0x3   :  { %16 = vsyncpa [#allocation4 + $0x1], 0  ;;  %s3774_s24 = smov 0   ;;  %s3776_s25 = smov 0  }
   0x4   :  { %s3778_s26 = smov 0   ;;  %s3780_s27 = smov 0  }
   0x5 LB: > { %s3795_s28 = sadd.s32 4294967295, %s3706_s27   ;;  %s2839_s29 = sadd.s32 4294967294, %s3706_s27   ;;  %s3706_s27 = sphi %s3780_s27, %s4398_s27   ;;  %s3702_s26 = sphi %s3778_s26, %s4397_s26   ;;  %s3698_s25 = sphi %s3776_s25, %s4396_s25   ;;  %s3694_s24 = sphi %s3774_s24, %s4395_s24  }
   0x6   : > { %s3799_s30 = sadd.s32 1, %s3706_s27   ;;  %s191_s8 = sadd.s32 1, %s3702_s26 }
   0x7   : > { %s188_s9 = ssub.s32 %s3706_s27, %s3799_s30  ;;  %p201_p0 = scmp.ne.s32.totalorder %s3702_s26, %s3698_s25 }
   0x8   : > { %p189_p1 = scmp.eq.s32.totalorder %s188_s9, 0  ;;  %p202_p2 = scmp.eq.s32.totalorder %s3795_s28, 1 }
   0x9   : > { %p207_p3 = scmp.ne.s32.totalorder %s3698_s25, %s3694_s24  ;;  %p208_p4 = scmp.eq.s32.totalorder %s2839_s29, 1 }
   0xa   : > { %s3810_s10 = scalar_select %p189_p1, %s3702_s26, %s191_s8  }
   0xb   : > { %p3812_p5 = por %p202_p2, %p201_p0  ;;  %p3816_p6 = por %p208_p4, %p207_p3 }
   0xc   : > { %4373 = sst [smem:[#allocation11_spill]] %s3810_s10  ;;  %p2840_p7 = scmp.ge.s32.totalorder %s3706_s27, 1 }
   0xd   : > { %s4374_s11 = scalar_select %p3812_p5, 1, 0 }
   0xe   : > { %s4375_s12 = scalar_select %p3816_p6, 1, 0 }
   0xf   : > { %p215_p8 = scmp.lt.s32.totalorder %s3706_s27, 3  ;;  %p4363_p9 = scmp.eq.s32.totalorder %s3795_s28, 0 }
  0x10   : > { %s3708_s14 = smov [#allocation2]   ;;  %s3709_s17 = smov [#allocation5]  }
  0x11   : > { %p3823_p10 = pnand %p2840_p7, %p215_p8  ;;  %s227_s15 = sshll.u32 %s3708_s14, 4  ;;  %s228_s15 = int_to_ptr.vmem [resolvable:$true] %s227_s15 }
  0x12   : > { %s243_s18 = sshll.u32 %s3709_s17, 4  ;;  %s3580_s21 = scalar_lea.hbm %s4357_s2, 1536  ;;  %s3835_s18 = int_to_ptr.vmem [resolvable:$true] %s243_s18 }
  0x13   : > { %s4376_s13 = scalar_select %p3823_p10, 1, 0 }
  0x14   : > { %p3349_p11 = pneg %p3823_p10  ;;  %p3581_p13 = scmp.ne.s32.totalorder %s4357_s2, %s3580_s21 }
  0x15   : > { %p3587_p3 = scmp.lt.u32.totalorder %s3580_s21, %s4357_s2 }
  0x16   : > { %p3831_p12 = pnand %p4363_p9, %p3349_p11 }
  0x18   : > { %p3582_p0 = pneg %p3831_p12 }
  0x1a   : > { %p3583_p1 = pnand %p3582_p0, %p3581_p13 }
  0x1c   : > { %p3584_p2 = pneg %p3583_p1 }
  0x1e   : > { %p3589_p4 = pnand %p3587_p3, %p3584_p2 }
  0x20   : > { %3592 = shalt.err (!%p3589_p4)
}
  0x21   : > { %s3593_s9 = scalar_lea.vmem %s228_s15, 1536  ;;  %p3601_p9 = scmp.lt.s32.totalorder %s228_s15, %s228_s15 }
  0x22   : > { %p3594_p7 = scmp.ne.s32.totalorder %s228_s15, %s3593_s9  ;;  %p3602_p6 = scmp.lt.s32.totalorder %s3593_s9, %s3593_s9 }
  0x24   : > { %p3596_p8 = pnand %p3594_p7, %p3582_p0  ;;  %p3603_p5 = por %p3602_p6, %p3601_p9 }
  0x26   : > { %p3597_p11 = pneg %p3596_p8 }
  0x28   : > { %p3604_p10 = pnand %p3603_p5, %p3597_p11 }
  0x2a   : > { %3607 = shalt.err (!%p3604_p10)
}
  0x2b   : > { %s3710_s14 = smov 128   ;;  %s3711_s17 = smov 8  }
  0x2c   : > { %3352 = dma.hbm_to_vmem [thread:$0]  (!%p3831_p12), %s4357_s2, 1536, %s228_s15, [#allocation3], %s3710_s14, %s3710_s14, %s3711_s17  }
  0x2d   : > { %s3608_s23 = scalar_lea.hbm %s4359_s4, 3072 }
  0x2e   : > { %p3609_p13 = scmp.ne.s32.totalorder %s4359_s4, %s3608_s23  ;;  %p3615_p9 = scmp.lt.u32.totalorder %s3608_s23, %s4359_s4 }
  0x30   : > { %p3611_p5 = pnand %p3609_p13, %p3582_p0 }
  0x32   : > { %p3612_p6 = pneg %p3611_p5 }
  0x34   : > { %p3617_p10 = pnand %p3615_p9, %p3612_p6 }
  0x36   : > { %3620 = shalt.err (!%p3617_p10)
}
  0x37   : > { %s3621_s15 = scalar_lea.vmem %s3835_s18, 3072  ;;  %p3629_p4 = scmp.lt.s32.totalorder %s3835_s18, %s3835_s18 }
  0x38   : > { %p3622_p1 = scmp.ne.s32.totalorder %s3835_s18, %s3621_s15  ;;  %p3630_p7 = scmp.lt.s32.totalorder %s3621_s15, %s3621_s15 }
  0x3a   : > { %p3624_p2 = pnand %p3622_p1, %p3582_p0  ;;  %p3631_p8 = por %p3630_p7, %p3629_p4 }
  0x3c   : > { %p3625_p3 = pneg %p3624_p2 }
  0x3e   : > { %p3632_p11 = pnand %p3631_p8, %p3625_p3 }
  0x40   : > { %3635 = shalt.err (!%p3632_p11)
}
  0x41   : > { %s3712_s10 = smov 256   ;;  %s3713_s14 = smov 16  }
  0x42   : > { %3355 = dma.hbm_to_vmem [thread:$0]  (!%p3831_p12), %s4359_s4, 3072, %s3835_s18, [#allocation6], %s3712_s10, %s3712_s10, %s3713_s14  }
  0x43   : > { %p4378_p13 = scmp.ne.s32.totalorder %s4376_s13, 0 }
  0x44   : > { %p4379_p0 = scmp.eq.s32.totalorder (!%p4378_p13), %s3795_s28, 0 }
  0x45   : > { %284 = sbr.rel (%p4378_p13) target bundleno = 1365 (0x555), region = 48 }
  0x4c   : > { %3681 = dma.done.wait (%p4379_p0), [#allocation3], 1536   ;;  %p4380_p5 = pmov %p4379_p0 }
  0x4d   : > { %p4381_p6 = pmov %p4379_p0 }
  0x4e   : > { %3683 = vsyncadd (%p4380_p5), [#allocation3], 4294965760 }
  0x4f   : > { %3685 = dma.done.wait (%p4381_p6), [#allocation6], 3072   ;;  %p4382_p9 = pmov %p4379_p0 }
  0x50   : > { %v3714_v0 = vmov 0.0|0.0   ;;  %v3715_v1 = vmov 0.0   ;;  %vm3716_vm0 = vmmov 0   ;;  %v438_v2 = vld [vmem:[#allocation5 + $0x8] sm:$0xff]  ;;  %v440_v3 = vld [vmem:[#allocation5 + $0x18] sm:$0xff]  ;;  %v437_v4 = vld [vmem:[#allocation5] sm:$0xff]  ;;  %v463_v59 = vlaneseq }
  0x51   : > { %3687 = vsyncadd (%p4382_p9), [#allocation6], 4294964224  ;;  %3201 = vmatprep.subr.bf16.mxu0 %v3714_v0  ;;  %543 = vmatprep.mubr.f32.mxu1 %v3715_v1  ;;  %v3219_v5 = vpack.c.bf16 %v440_v3, %v438_v2  ;;  %v439_v6 = vld [vmem:[#allocation5 + $0x10] sm:$0xff]  ;;  %v442_v7 = vld [vmem:[#allocation5 + $0x28] sm:$0xff]  ;;  %p328_p12 = scmp.lt.s32.totalorder %s3795_s28, 1  ;;  %vm363_vm1 = vcmask 785408  }
  0x52   : > { %3030 = vmatprep.mubr.msk.f32.mxu0 %vm3716_vm0, %v3715_v1  ;;  %v444_v8 = vld [vmem:[#allocation5 + $0x38] sm:$0xff]  ;;  %v3221_v9 = vpack.c.bf16 %v439_v6, %v437_v4  ;;  %v441_v11 = vld [vmem:[#allocation5 + $0x20] sm:$0xff]  ;;  %v443_v12 = vld [vmem:[#allocation5 + $0x30] sm:$0xff]  ;;  %v464_v60 = vshrl.u32 %v463_v59, 7  ;;  %vm556_vm2 = vcmask 64512   ;;  %s3717_s17 = smov 104  }
  0x53   : > { %v3223_v10 = vpack.c.bf16 %v444_v8, %v442_v7  ;;  %v446_v13 = vld [vmem:[#allocation5 + $0x48] sm:$0xff]  ;;  %3220 = vmatprep.subr.bf16.mxu1 %v3219_v5  ;;  %v448_v14 = vld [vmem:[#allocation5 + $0x58] sm:$0xff]  ;;  %v3225_v15 = vpack.c.bf16 %v443_v12, %v441_v11  ;;  %v344_v16 = vld [vmem:[#allocation2] sm:$0xff]  ;;  %s3904_s13 = scalar_select %p328_p12, %s3795_s28, 1  ;;  %vm1704_vm4 = vcmask 1041408   ;;  %vm3732_vm5 = vmmov 1  }
  0x54   : > { %3222 = vmatpush1.bf16.msra.mxu1 %v3221_v9  ;;  %v345_v17 = vld [vmem:[#allocation2 + $0x8] sm:$0xff]  ;;  %v3227_v18 = vpack.c.bf16 %v448_v14, %v446_v13  ;;  %v445_v19 = vld [vmem:[#allocation5 + $0x40] sm:$0xff]  ;;  %v447_v20 = vld [vmem:[#allocation5 + $0x50] sm:$0xff]  ;;  %v465_v61 = vsub.s32 0, %v464_v60  ;;  %v469_v63 = vsub.s32 1, %v464_v60  ;;  %s3718_s19 = smov 120  }
  0x55   : > { %3224 = vmatprep.subr.bf16.mxu1 %v3223_v10  ;;  %v3202_v21 = vpack.c.bf16 %v345_v17, %v344_v16  ;;  %v450_v22 = vld [vmem:[#allocation5 + $0x68] sm:$0xff]  ;;  %v452_v23 = vld [vmem:[#allocation5 + $0x78] sm:$0xff]  ;;  %v346_v24 = vld [vmem:[#allocation2 + $0x10] sm:$0xff]  ;;  %v3229_v27 = vpack.c.bf16 %v447_v20, %v445_v19  ;;  %s2920_s16 = sshll.u32 %s3904_s13, 4  ;;  %s2848_s22 = sshll.u32 %s3904_s13, 3  ;;  %vm1563_vm7 = vcmask 80896  }
  0x56   : > { %v347_v25 = vld [vmem:[#allocation2 + $0x18] sm:$0xff]  ;;  %v348_v28 = vld [vmem:[#allocation2 + $0x20] sm:$0xff]  ;;  %v349_v29 = vld [vmem:[#allocation2 + $0x28] sm:$0xff]  ;;  %v3231_v30 = vpack.c.bf16 %v452_v23, %v450_v22  ;;  %s336_s21 = scalar_lea.vmem %s4356_s1, %s2920_s16  ;;  %s331_s8 = scalar_lea.vmem %s4355_s0, %s2848_s22  ;;  %vm2699_vm8 = vcmask 130048   ;;  %vm2701_vm9 = vcmask 195584   ;;  %vm2703_vm10 = vcmask 261120  }
  0x57   : > { %3203 = vmatpush3.bf16.msra.mxu0 %v3202_v21  ;;  %v3205_v26 = vpack.c.bf16 %v347_v25, %v346_v24  ;;  %v449_v31 = vld [vmem:[#allocation5 + $0x60] sm:$0xff]  ;;  %v451_v32 = vld [vmem:[#allocation5 + $0x70] sm:$0xff]  ;;  %v454_v33 = vld [vmem:[#allocation5 + $0x88] sm:$0xff]  ;;  %v3208_v35 = vpack.c.bf16 %v349_v29, %v348_v28  ;;  %s3719_s16 = smov 112   ;;  %s3720_s18 = smov 96   ;;  %vm2705_vm11 = vcmask 326656  }
  0x58   : > { %3226 = vmatpush1.bf16.msra.mxu1 %v3225_v15  ;;  %3204 = vmatprep.subr.bf16.mxu0 %v3714_v0  ;;  %v456_v34 = vld [vmem:[#allocation5 + $0x98] sm:$0xff]  ;;  %v3233_v36 = vpack.c.bf16 %v451_v32, %v449_v31  ;;  %v350_v37 = vld [vmem:[#allocation2 + $0x30] sm:$0xff]  ;;  %v453_v40 = vld [vmem:[#allocation5 + $0x80] sm:$0xff]  ;;  %s3721_s20 = smov 88   ;;  %s4366_s23 = smov 72   ;;  %vm2707_vm12 = vcmask 392192  }
  0x59   : > { %3228 = vmatprep.subr.bf16.mxu1 %v3227_v18  ;;  %v351_v38 = vld [vmem:[#allocation2 + $0x38] sm:$0xff]  ;;  %v3235_v39 = vpack.c.bf16 %v456_v34, %v454_v33  ;;  %v455_v41 = vld [vmem:[#allocation5 + $0x90] sm:$0xff]  ;;  %v458_v42 = vld [vmem:[#allocation5 + $0xa8] sm:$0xff]  ;;  %s4370_s29 = smov 64   ;;  %s4372_s9 = smov 48   ;;  %vm2709_vm13 = vcmask 457728  }
  0x5a   : > { %v460_v43 = vld [vmem:[#allocation5 + $0xb8] sm:$0xff]  ;;  %v3211_v44 = vpack.c.bf16 %v351_v38, %v350_v37  ;;  %v3237_v45 = vpack.c.bf16 %v455_v41, %v453_v40  ;;  %v352_v46 = vld [vmem:[#allocation2 + $0x40] sm:$0xff]  ;;  %v353_v47 = vld [vmem:[#allocation2 + $0x48] sm:$0xff]  ;;  %s3727_s15 = smov 40   ;;  %s3728_s10 = smov 24   ;;  %vm2711_vm14 = vcmask 523264  }
  0x5b   : > { %3206 = vmatpush3.bf16.msra.mxu0 %v3205_v26  ;;  %v3239_v48 = vpack.c.bf16 %v460_v43, %v458_v42  ;;  %v457_v49 = vld [vmem:[#allocation5 + $0xa0] sm:$0xff]  ;;  %v459_v50 = vld [vmem:[#allocation5 + $0xb0] sm:$0xff]  ;;  %v3214_v51 = vpack.c.bf16 %v353_v47, %v352_v46  ;;  %v355_v54 = vld [vmem:[#allocation2 + $0x58] sm:$0xff]  ;;  %s3729_s14 = smov 32   ;;  %s4387_s13 = smov 80   ;;  %vm2713_vm15 = vcmask 588800  }
  0x5c   : > { %3230 = vmatpush1.bf16.msra.mxu1 %v3229_v27  ;;  %3207 = vmatprep.subr.bf16.mxu0 %v3714_v0  ;;  %v3241_v52 = vpack.c.bf16 %v459_v50, %v457_v49  ;;  %v354_v53 = vld [vmem:[#allocation2 + $0x50] sm:$0xff]  ;;  %v342_v56 = vld [vmem:[%s336_s21] sm:$0xff]  ;;  %v343_v58 = vld [vmem:[%s336_s21 + $0x8] sm:$0x3]  ;;  %s4368_s21 = smov 80   ;;  %p4392_p1 = scmp.ne.s32.totalorder %s4374_s11, 0 }
  0x5d   : > { %3232 = vmatprep.subr.bf16.mxu1 %v3231_v30  ;;  %v3217_v55 = vpack.c.bf16 %v355_v54, %v354_v53  ;;  %v341_v57 = vld [vmem:[%s331_s8] sm:$0xff]  ;;  %vm3941_vm3 = vmpackc.low %vm556_vm2, %vm556_vm2  ;;  %s4371_s8 = smov 56  }
  0x5e   : > { %v461_v62 = vld [vmem:[%s4360_s5] sm:$0x3]  ;;  %vm4043_vm6 = vmpackc.low %vm1704_vm4, %vm3732_vm5 }
  0x5f   : > { %3209 = vmatpush3.bf16.msra.mxu0 %v3208_v35  ;;  %v466_v3 = vrot.slane %v461_v62, %v465_v61  ;;  %v470_v5 = vrot.slane %v461_v62, %v469_v63  ;;  %v2852_v6 = vld [vmem:[%s4358_s3] ss:$0 sm:$0xff] }
  0x60   : > { %3234 = vmatpush1.bf16.msra.mxu1 %v3233_v36  ;;  %3210 = vmatprep.subr.bf16.mxu0 %v3714_v0 }
  0x61   : > { %3236 = vmatprep.subr.bf16.mxu1 %v3235_v39 }
  0x63   : > { %3212 = vmatpush3.bf16.msra.mxu0 %v3211_v44 }
  0x64   : > { %3238 = vmatpush1.bf16.msra.mxu1 %v3237_v45  ;;  %3213 = vmatprep.subr.bf16.mxu0 %v3714_v0 }
  0x65   : > { %3240 = vmatprep.subr.bf16.mxu1 %v3239_v48 }
  0x67   : > { %3215 = vmatpush3.bf16.msra.mxu0 %v3214_v51 }
  0x68   : > { %3242 = vmatpush1.bf16.msra.mxu1 %v3241_v52  ;;  %3216 = vmatprep.subr.bf16.mxu0 %v3714_v0 }
  0x69   : > { %3247 = vmatprep.subr.bf16.mxu1 %v3714_v0 }
  0x6b   : > { %2854 = vmatmul.mubr.msk.f32.vlgmr.msra.gmra.mrb[0].mxu1 %vm363_vm1, %v342_v56  ;;  %3218 = vmatpush3.bf16.msra.mxu0 %v3217_v55 }
  0x6c   : > { %549 = vmatprep.mubr.f32.mxu1 %v3715_v1  ;;  %3243 = vmatprep.subr.bf16.mxu0 %v3714_v0 }
  0x6e   : > { %3031 = vmatmul.mubr.msk.f32.vlgmr.msra.gmra.mrb[0].mxu0 %vm363_vm1, %v341_v57 }
  0x6f   : > { %2855 = vmatmul.mubr.msk.f32.gmra.mrb[2].mxu1 %vm363_vm1, %v343_v58  ;;  %3037 = vmatprep.mubr.msk.f32.mxu0 %vm3716_vm0, %v3715_v1 }
  0x70   : > { %3044 = vmatprep.mubr.msk.f32.mxu1 %vm3716_vm0, %v3715_v1 }
 0x13e   : > { %v545_v2 = vpop.f32.mrb[0].mxu1 }
 0x13f   : > { %v547_v4 = vpop.f32.mrb[1].mxu1  ;;  %v546_v10 = vadd.f32 %v545_v2, %v466_v3 }
 0x140   : > { %v3935_v13 = vadd.f32 %v547_v4, %v470_v5 }
 0x141   : > { %v433_v7 = vpop.f32.mrb[0].mxu0 }
 0x142   : > { %v551_v8 = vpop.f32.mrb[2].mxu1  ;;  %v3032_v9 = vpop.f32.mrb[1].mxu0  ;;  %v434_v15 = vadd.f32 %v2852_v6, %v433_v7 }
 0x143   : > { %v552_v11 = vadd.f32 %v551_v8, %v466_v3  ;;  %v553_v12 = vpop.f32.mrb[3].mxu1 }
 0x144   : > { %v3937_v14 = vadd.f32 %v553_v12, %v470_v5 }
 0x145   : > { %v3432_v16 = vpack.i.bf16 %v552_v11, %v546_v10  ;;  %v3244_v17 = vpack.c.bf16 %v552_v11, %v546_v10 }
 0x146   : > { %v3952_v19 = vpack.i.bf16 %v3937_v14, %v3935_v13  ;;  %v3308_v20 = vpack.c.bf16 %v3937_v14, %v3935_v13 }
 0x147   : > { %3433 = vrot.lane.b32.xlu1 %v3432_v16, %s3717_s17  ;;  %3423 = vrot.lane.b32.xlu0 %v3432_v16, %s3718_s19 }
 0x148   : > { %3246 = vmatpush3.bf16.xpose.msk.msra.mxu0 %vm3941_vm3, %v3244_v17 }
 0x149   : > { %3251 = vmatprep.subr.bf16.mxu0 %v3714_v0 }
 0x14b   : > { %3428 = vrot.lane.b32.xlu0 %v3432_v16, %s3719_s16  ;;  %636 = vrot.lane.b32.xlu1 %v434_v15, %s3718_s19 }
 0x14f   : > { %3038 = vmatmul.mubr.msk.f32.vlgmr.msra.gmra.mrb[2].mxu0 %vm556_vm2, %v434_v15  ;;  %3438 = vrot.lane.b32.xlu0 %v3432_v16, %s3720_s18 }
 0x150   : > { %3443 = vrot.lane.b32.xlu1 %v3432_v16, %s3721_s20  ;;  %3051 = vmatprep.mubr.msk.f32.mxu0 %vm3716_vm0, %v3715_v1 }
 0x153   : > { %718 = vrot.lane.b32.xlu0 %v434_v15, %s3719_s16 }
 0x154   : > { %800 = vrot.lane.b32.xlu1 %v434_v15, %s3717_s17 }
 0x157   : > { %3448 = vrot.lane.b32.xlu0 %v3432_v16, %s4368_s21 }
 0x158   : > { %3453 = vrot.lane.b32.xlu1 %v3432_v16, %s4366_s23 }
 0x15b   : > { %882 = vrot.lane.b32.xlu0 %v434_v15, %s3720_s18 }
 0x15c   : > { %964 = vrot.lane.b32.xlu1 %v434_v15, %s3721_s20 }
 0x15f   : > { %3458 = vrot.lane.b32.xlu0 %v3432_v16, %s4370_s29 }
 0x160   : > { %3463 = vrot.lane.b32.xlu1 %v3432_v16, %s4371_s8 }
 0x163   : > { %1046 = vrot.lane.b32.xlu0 %v434_v15, %s4368_s21  ;;  %s3731_s21 = smov 8  }
 0x164   : > { %1128 = vrot.lane.b32.xlu1 %v434_v15, %s4366_s23  ;;  %s3730_s23 = smov 16  }
 0x167   : > { %3468 = vrot.lane.b32.xlu0 %v3432_v16, %s4372_s9 }
 0x168   : > { %3473 = vrot.lane.b32.xlu1 %v3432_v16, %s3727_s15 }
 0x16b   : > { %1210 = vrot.lane.b32.xlu0 %v434_v15, %s4370_s29 }
 0x16c   : > { %1292 = vrot.lane.b32.xlu1 %v434_v15, %s4371_s8 }
 0x16f   : > { %1374 = vrot.lane.b32.xlu0 %v434_v15, %s4372_s9  ;;  %s340_s9 = scalar_lea.vmem %s4361_s6, %s2848_s22  ;;  %s4388_s22 = smov 72  }
 0x170   : > { %1456 = vrot.lane.b32.xlu1 %v434_v15, %s3727_s15 }
 0x173   : > { %3483 = vrot.lane.b32.xlu0 %v3432_v16, %s3728_s10 }
 0x174   : > { %3478 = vrot.lane.b32.xlu1 %v3432_v16, %s3729_s14 }
 0x178   : > { %3488 = vrot.lane.b32.xlu1 %v3432_v16, %s3730_s23 }
 0x17c   : > { %3493 = vrot.lane.b32.xlu1 %v3432_v16, %s3731_s21 }
 0x1b9   : > { %v3434_v21 = vpop.permute.xlu1 %3433  ;;  %v3424_v22 = vpop.permute.xlu0 %3423 }
 0x1ba   : > { %v3426_v23 = vunpack.i.h.bf16 %v3424_v22  ;;  %v3425_v24 = vunpack.i.l.bf16 %v3424_v22  ;;  %v3436_v30 = vunpack.i.h.bf16 %v3434_v21  ;;  %v3435_v31 = vunpack.i.l.bf16 %v3434_v21 }
 0x1bc   : > { %v3248_v25 = vpack.c.bf16 %v3426_v23, %v3425_v24  ;;  %v3256_v35 = vpack.c.bf16 %v3436_v30, %v3435_v31 }
 0x1bd   : > { %v3429_v26 = vpop.permute.xlu0 %3428  ;;  %v637_v27 = vpop.permute.xlu1 %636 }
 0x1be   : > { %v3431_v28 = vunpack.i.h.bf16 %v3429_v26  ;;  %v3430_v29 = vunpack.i.l.bf16 %v3429_v26  ;;  %3250 = vmatpush3.bf16.xpose.msk.msra.mxu1 %vm3941_vm3, %v3248_v25 }
 0x1bf   : > { %3255 = vmatprep.subr.bf16.mxu1 %v3714_v0 }
 0x1c0   : > { %v3252_v32 = vpack.c.bf16 %v3431_v28, %v3430_v29 }
 0x1c1   : > { %v3439_v33 = vpop.permute.xlu0 %3438 }
 0x1c2   : > { %v3444_v34 = vpop.permute.xlu1 %3443  ;;  %3254 = vmatpush3.bf16.xpose.msk.msra.mxu0 %vm3941_vm3, %v3252_v32  ;;  %v3441_v36 = vunpack.i.h.bf16 %v3439_v33  ;;  %v3440_v37 = vunpack.i.l.bf16 %v3439_v33 }
 0x1c3   : > { %3259 = vmatprep.subr.bf16.mxu0 %v3714_v0  ;;  %v3446_v41 = vunpack.i.h.bf16 %v3444_v34  ;;  %v3445_v42 = vunpack.i.l.bf16 %v3444_v34 }
 0x1c4   : > { %v3260_v40 = vpack.c.bf16 %v3441_v36, %v3440_v37 }
 0x1c5   : > { %v719_v38 = vpop.permute.xlu0 %718  ;;  %3045 = vmatmul.mubr.msk.f32.vlgmr.msra.gmra.mrb[4].mxu1 %vm556_vm2, %v637_v27  ;;  %v3264_v45 = vpack.c.bf16 %v3446_v41, %v3445_v42  ;;  %v4064_v27 = vld [vmem:[%s340_s9] sm:$0xff] }
 0x1c6   : > { %v801_v39 = vpop.permute.xlu1 %800  ;;  %3258 = vmatpush3.bf16.xpose.msk.msra.mxu1 %vm3941_vm3, %v3256_v35  ;;  %3058 = vmatprep.mubr.msk.f32.mxu1 %vm3716_vm0, %v3715_v1 }
 0x1c7   : > { %3263 = vmatprep.subr.bf16.mxu1 %v3714_v0 }
 0x1c9   : > { %v3449_v43 = vpop.permute.xlu0 %3448  ;;  %3052 = vmatmul.mubr.msk.f32.vlgmr.msra.gmra.mrb[4].mxu0 %vm556_vm2, %v719_v38 }
 0x1ca   : > { %v3454_v44 = vpop.permute.xlu1 %3453  ;;  %3262 = vmatpush3.bf16.xpose.msk.msra.mxu0 %vm3941_vm3, %v3260_v40  ;;  %3065 = vmatprep.mubr.msk.f32.mxu0 %vm3716_vm0, %v3715_v1  ;;  %v3451_v46 = vunpack.i.h.bf16 %v3449_v43  ;;  %v3450_v47 = vunpack.i.l.bf16 %v3449_v43 }
 0x1cb   : > { %3267 = vmatprep.subr.bf16.mxu0 %v3714_v0  ;;  %v3456_v51 = vunpack.i.h.bf16 %v3454_v44  ;;  %v3455_v52 = vunpack.i.l.bf16 %v3454_v44 }
 0x1cc   : > { %v3268_v50 = vpack.c.bf16 %v3451_v46, %v3450_v47 }
 0x1cd   : > { %v883_v48 = vpop.permute.xlu0 %882  ;;  %3059 = vmatmul.mubr.msk.f32.vlgmr.msra.gmra.mrb[6].mxu1 %vm556_vm2, %v801_v39  ;;  %v3272_v55 = vpack.c.bf16 %v3456_v51, %v3455_v52 }
 0x1ce   : > { %v965_v49 = vpop.permute.xlu1 %964  ;;  %3266 = vmatpush3.bf16.xpose.msk.msra.mxu1 %vm3941_vm3, %v3264_v45  ;;  %3072 = vmatprep.mubr.msk.f32.mxu1 %vm3716_vm0, %v3715_v1 }
 0x1cf   : > { %3271 = vmatprep.subr.bf16.mxu1 %v3714_v0 }
 0x1d1   : > { %v3459_v53 = vpop.permute.xlu0 %3458  ;;  %3066 = vmatmul.mubr.msk.f32.vlgmr.msra.gmra.mrb[6].mxu0 %vm556_vm2, %v883_v48 }
 0x1d2   : > { %v3464_v54 = vpop.permute.xlu1 %3463  ;;  %3270 = vmatpush3.bf16.xpose.msk.msra.mxu0 %vm3941_vm3, %v3268_v50  ;;  %3079 = vmatprep.mubr.msk.f32.mxu0 %vm3716_vm0, %v3715_v1  ;;  %v3461_v56 = vunpack.i.h.bf16 %v3459_v53  ;;  %v3460_v57 = vunpack.i.l.bf16 %v3459_v53 }
 0x1d3   : > { %3275 = vmatprep.subr.bf16.mxu0 %v3714_v0  ;;  %v3466_v61 = vunpack.i.h.bf16 %v3464_v54  ;;  %v3465_v62 = vunpack.i.l.bf16 %v3464_v54 }
 0x1d4   : > { %v3276_v60 = vpack.c.bf16 %v3461_v56, %v3460_v57 }
 0x1d5   : > { %v1047_v58 = vpop.permute.xlu0 %1046  ;;  %3073 = vmatmul.mubr.msk.f32.vlgmr.msra.gmra.mrb[8].mxu1 %vm556_vm2, %v965_v49  ;;  %v3280_v3 = vpack.c.bf16 %v3466_v61, %v3465_v62 }
 0x1d6   : > { %v1129_v59 = vpop.permute.xlu1 %1128  ;;  %3274 = vmatpush3.bf16.xpose.msk.msra.mxu1 %vm3941_vm3, %v3272_v55  ;;  %3086 = vmatprep.mubr.msk.f32.mxu1 %vm3716_vm0, %v3715_v1 }
 0x1d7   : > { %3279 = vmatprep.subr.bf16.mxu1 %v3714_v0 }
 0x1d9   : > { %v3469_v63 = vpop.permute.xlu0 %3468  ;;  %3080 = vmatmul.mubr.msk.f32.vlgmr.msra.gmra.mrb[8].mxu0 %vm556_vm2, %v1047_v58 }
 0x1da   : > { %v3474_v2 = vpop.permute.xlu1 %3473  ;;  %3278 = vmatpush3.bf16.xpose.msk.msra.mxu0 %vm3941_vm3, %v3276_v60  ;;  %3093 = vmatprep.mubr.msk.f32.mxu0 %vm3716_vm0, %v3715_v1  ;;  %v3471_v4 = vunpack.i.h.bf16 %v3469_v63  ;;  %v3470_v5 = vunpack.i.l.bf16 %v3469_v63 }
 0x1db   : > { %3283 = vmatprep.subr.bf16.mxu0 %v3714_v0  ;;  %v3476_v9 = vunpack.i.h.bf16 %v3474_v2  ;;  %v3475_v10 = vunpack.i.l.bf16 %v3474_v2 }
 0x1dc   : > { %v3284_v8 = vpack.c.bf16 %v3471_v4, %v3470_v5 }
 0x1dd   : > { %v1211_v6 = vpop.permute.xlu0 %1210  ;;  %3087 = vmatmul.mubr.msk.f32.vlgmr.msra.gmra.mrb[10].mxu1 %vm556_vm2, %v1129_v59  ;;  %v3288_v15 = vpack.c.bf16 %v3476_v9, %v3475_v10 }
 0x1de   : > { %v1293_v7 = vpop.permute.xlu1 %1292  ;;  %3282 = vmatpush3.bf16.xpose.msk.msra.mxu1 %vm3941_vm3, %v3280_v3  ;;  %3100 = vmatprep.mubr.msk.f32.mxu1 %vm3716_vm0, %v3715_v1 }
 0x1df   : > { %3287 = vmatprep.subr.bf16.mxu1 %v3714_v0 }
 0x1e1   : > { %v1375_v11 = vpop.permute.xlu0 %1374  ;;  %3094 = vmatmul.mubr.msk.f32.vlgmr.msra.gmra.mrb[10].mxu0 %vm556_vm2, %v1211_v6 }
 0x1e2   : > { %v1457_v12 = vpop.permute.xlu1 %1456  ;;  %3286 = vmatpush3.bf16.xpose.msk.msra.mxu0 %vm3941_vm3, %v3284_v8  ;;  %3107 = vmatprep.mubr.msk.f32.mxu0 %vm3716_vm0, %v3715_v1 }
 0x1e3   : > { %3291 = vmatprep.subr.bf16.mxu0 %v3714_v0 }
 0x1e5   : > { %v3484_v16 = vpop.permute.xlu0 %3483  ;;  %3101 = vmatmul.mubr.msk.f32.vlgmr.msra.gmra.mrb[12].mxu1 %vm556_vm2, %v1293_v7 }
 0x1e6   : > { %v3479_v17 = vpop.permute.xlu1 %3478  ;;  %3290 = vmatpush3.bf16.xpose.msk.msra.mxu1 %vm3941_vm3, %v3288_v15  ;;  %3114 = vmatprep.mubr.msk.f32.mxu1 %vm3716_vm0, %v3715_v1  ;;  %v3486_v23 = vunpack.i.h.bf16 %v3484_v16  ;;  %v3485_v24 = vunpack.i.l.bf16 %v3484_v16 }
 0x1e7   : > { %v3481_v21 = vunpack.i.h.bf16 %v3479_v17  ;;  %v3480_v22 = vunpack.i.l.bf16 %v3479_v17  ;;  %3295 = vmatprep.subr.bf16.mxu1 %v3714_v0 }
 0x1e8   : > { %v3296_v18 = vpack.c.bf16 %v3486_v23, %v3485_v24 }
 0x1e9   : > { %v3292_v26 = vpack.c.bf16 %v3481_v21, %v3480_v22  ;;  %3108 = vmatmul.mubr.msk.f32.vlgmr.msra.gmra.mrb[12].mxu0 %vm556_vm2, %v1375_v11 }
 0x1ea   : > { %3121 = vmatprep.mubr.msk.f32.mxu0 %vm3716_vm0, %v3715_v1 }
 0x1eb   : > { %3294 = vmatpush3.bf16.msk.msra.mxu0 %vm4043_vm6, %v3292_v26 }
 0x1ec   : > { %3299 = vmatprep.subr.bf16.mxu0 %v3714_v0 }
 0x1ed   : > { %3115 = vmatmul.mubr.msk.f32.vlgmr.msra.gmra.mrb[14].mxu1 %vm556_vm2, %v1457_v12 }
 0x1ee   : > { %3298 = vmatpush3.bf16.msk.msra.mxu1 %vm4043_vm6, %v3296_v18  ;;  %3128 = vmatprep.mubr.msk.f32.mxu1 %vm3716_vm0, %v3715_v1 }
 0x1ef   : > { %3303 = vmatprep.subr.bf16.mxu1 %v3714_v0 }
 0x222   : > { %v632_v28 = vpop.f32.mrb[2].mxu0 }
 0x223   : > { %v1538_v29 = vmul.f32 0.35355338, %v632_v28  ;;  %v3039_v30 = vpop.f32.mrb[3].mxu0 }
 0x225   : > { %v4067_v31 = vadd.f32 %v4064_v27, %v1538_v29 }
 0x227   : > { %v1564_v32 = vsel %vm1563_vm7, %v4067_v31, -inf }
 0x228   : > { %1565 = vmax.xlane.f32.xlu0 %v1564_v32 }
 0x298   : > { %v714_v33 = vpop.f32.mrb[4].mxu1 }
 0x299   : > { %v1539_v34 = vmul.f32 0.35355338, %v714_v33  ;;  %v3046_v35 = vpop.f32.mrb[5].mxu1 }
 0x29b   : > { %v4072_v36 = vadd.f32 %v4064_v27, %v1539_v34 }
 0x29c   : > { %v796_v37 = vpop.f32.mrb[4].mxu0 }
 0x29d   : > { %v1540_v38 = vmul.f32 0.35355338, %v796_v37  ;;  %v3053_v39 = vpop.f32.mrb[5].mxu0  ;;  %v1567_v40 = vsel %vm1563_vm7, %v4072_v36, -inf }
 0x29e   : > { %1568 = vmax.xlane.f32.xlu1 %v1567_v40 }
 0x29f   : > { %v4077_v41 = vadd.f32 %v4064_v27, %v1540_v38  ;;  %v4141_v38 = vpop.permute.xlu1 %3488 }
 0x2a0   : > { %v878_v42 = vpop.f32.mrb[6].mxu1 }
 0x2a1   : > { %v1541_v43 = vmul.f32 0.35355338, %v878_v42  ;;  %v3060_v44 = vpop.f32.mrb[7].mxu1  ;;  %v1570_v45 = vsel %vm1563_vm7, %v4077_v41, -inf }
 0x2a2   : > { %1571 = vmax.xlane.f32.xlu0 %v1570_v45 }
 0x2a3   : > { %v4082_v46 = vadd.f32 %v4064_v27, %v1541_v43  ;;  %v4143_v39 = vpop.permute.xlu1 %3493 }
 0x2a4   : > { %v960_v47 = vpop.f32.mrb[6].mxu0 }
 0x2a5   : > { %v1542_v48 = vmul.f32 0.35355338, %v960_v47  ;;  %v3067_v49 = vpop.f32.mrb[7].mxu0  ;;  %v1573_v50 = vsel %vm1563_vm7, %v4082_v46, -inf }
 0x2a6   : > { %1574 = vmax.xlane.f32.xlu0 %v1573_v50 }
 0x2a7   : > { %v4087_v51 = vadd.f32 %v4064_v27, %v1542_v48 }
 0x2a8   : > { %v1042_v52 = vpop.f32.mrb[8].mxu1 }
 0x2a9   : > { %v1543_v53 = vmul.f32 0.35355338, %v1042_v52  ;;  %v3074_v54 = vpop.f32.mrb[9].mxu1  ;;  %v1576_v55 = vsel %vm1563_vm7, %v4087_v51, -inf }
 0x2aa   : > { %1577 = vmax.xlane.f32.xlu1 %v1576_v55 }
 0x2ab   : > { %v4092_v56 = vadd.f32 %v4064_v27, %v1543_v53 }
 0x2ac   : > { %v1124_v57 = vpop.f32.mrb[8].mxu0 }
 0x2ad   : > { %v1544_v58 = vmul.f32 0.35355338, %v1124_v57  ;;  %v3081_v59 = vpop.f32.mrb[9].mxu0  ;;  %v1579_v60 = vsel %vm1563_vm7, %v4092_v56, -inf }
 0x2ae   : > { %1580 = vmax.xlane.f32.xlu0 %v1579_v60 }
 0x2af   : > { %v4097_v61 = vadd.f32 %v4064_v27, %v1544_v58 }
 0x2b0   : > { %v1206_v62 = vpop.f32.mrb[10].mxu1 }
 0x2b1   : > { %v1545_v63 = vmul.f32 0.35355338, %v1206_v62  ;;  %v3088_v2 = vpop.f32.mrb[11].mxu1  ;;  %v1582_v3 = vsel %vm1563_vm7, %v4097_v61, -inf }
 0x2b2   : > { %1583 = vmax.xlane.f32.xlu1 %v1582_v3 }
 0x2b3   : > { %v4102_v4 = vadd.f32 %v4064_v27, %v1545_v63 }
 0x2b4   : > { %v1288_v5 = vpop.f32.mrb[10].mxu0 }
 0x2b5   : > { %v1546_v6 = vmul.f32 0.35355338, %v1288_v5  ;;  %v3095_v7 = vpop.f32.mrb[11].mxu0  ;;  %v1585_v8 = vsel %vm1563_vm7, %v4102_v4, -inf  ;;  %v1566_v33 = vpop.xlane.xlu0 %1565 }
 0x2b6   : > { %1586 = vmax.xlane.f32.xlu0 %v1585_v8 }
 0x2b7   : > { %v4107_v9 = vadd.f32 %v4064_v27, %v1546_v6 }
 0x2b8   : > { %v1370_v10 = vpop.f32.mrb[12].mxu1 }
 0x2b9   : > { %v1547_v11 = vmul.f32 0.35355338, %v1370_v10  ;;  %v3102_v12 = vpop.f32.mrb[13].mxu1  ;;  %v1588_v15 = vsel %vm1563_vm7, %v4107_v9, -inf }
 0x2ba   : > { %1589 = vmax.xlane.f32.xlu1 %v1588_v15 }
 0x2bb   : > { %v4112_v16 = vadd.f32 %v4064_v27, %v1547_v11 }
 0x2bc   : > { %v1452_v17 = vpop.f32.mrb[12].mxu0 }
 0x2bd   : > { %v1548_v21 = vmul.f32 0.35355338, %v1452_v17  ;;  %v3109_v22 = vpop.f32.mrb[13].mxu0  ;;  %v1591_v23 = vsel %vm1563_vm7, %v4112_v16, -inf }
 0x2be   : > { %1592 = vmax.xlane.f32.xlu0 %v1591_v23 }
 0x2bf   : > { %v4117_v24 = vadd.f32 %v4064_v27, %v1548_v21 }
 0x2c0   : > { %v1534_v26 = vpop.f32.mrb[14].mxu1 }
 0x2c1   : > { %v1549_v18 = vmul.f32 0.35355338, %v1534_v26  ;;  %v3116_v28 = vpop.f32.mrb[15].mxu1  ;;  %v1594_v29 = vsel %vm1563_vm7, %v4117_v24, -inf }
 0x2c2   : > { %1595 = vmax.xlane.f32.xlu1 %v1594_v29 }
 0x2c3   : > { %v4122_v30 = vadd.f32 %v4064_v27, %v1549_v18  ;;  %v1600_v27 = vsub.f32 %v4067_v31, %v1566_v33 }
 0x2c5   : > { %v1597_v32 = vsel %vm1563_vm7, %v4122_v30, -inf  ;;  %v1612_v34 = vmul.f32 1.442695, %v1600_v27 }
 0x2c6   : > { %1598 = vmax.xlane.f32.xlu0 %v1597_v32 }
 0x2c7   : > { %3532 = vpow2.f32 %v1612_v34 }
 0x2d1   : > { %v4137_v35 = vpop.eup %3532 }
 0x2d2   : > { %v1636_v37 = vsel %vm1563_vm7, %v4137_v35, 0.0 }
 0x2d3   : > { %3503 = vrot.lane.b32.xlu1 %v3952_v19, %s3719_s16  ;;  %s4391_s16 = smov 64  }
 0x2d7   : > { %3513 = vrot.lane.b32.xlu1 %v3952_v19, %s3720_s18  ;;  %s325_s18 = sand.u32 1, %s3698_s25  }
 0x2dc   : > { %3498 = vrot.lane.b32.xlu0 %v3952_v19, %s3718_s19  ;;  %s4390_s19 = smov 56  }
 0x2e0   : > { %3508 = vrot.lane.b32.xlu0 %v3952_v19, %s3717_s17  ;;  %s4389_s17 = smov 48  }
 0x2e4   : > { %3518 = vrot.lane.b32.xlu0 %v3952_v19, %s3721_s20 }
 0x2fb   : > { %1637 = vadd.xlane.f32.xlu1 %v1636_v37 }
 0x32b   : > { %v1569_v40 = vpop.xlane.xlu1 %1568 }
 0x32c   : > { %v1601_v42 = vsub.f32 %v4072_v36, %v1569_v40 }
 0x32e   : > { %v1614_v43 = vmul.f32 1.442695, %v1601_v42 }
 0x32f   : > { %v1572_v44 = vpop.xlane.xlu0 %1571 }
 0x330   : > { %3534 = vpow2.f32 %v1614_v43  ;;  %v1602_v31 = vsub.f32 %v4077_v41, %v1572_v44 }
 0x332   : > { %v1616_v45 = vmul.f32 1.442695, %v1602_v31  ;;  %v3491_v31 = vunpack.i.h.bf16 %v4141_v38 }
 0x333   : > { %v1575_v47 = vpop.xlane.xlu0 %1574 }
 0x334   : > { %3536 = vpow2.f32 %v1616_v45  ;;  %v1603_v48 = vsub.f32 %v4082_v46, %v1575_v47  ;;  %v3490_v45 = vunpack.i.l.bf16 %v4141_v38 }
 0x336   : > { %v1618_v49 = vmul.f32 1.442695, %v1603_v48 }
 0x337   : > { %v1578_v50 = vpop.xlane.xlu1 %1577 }
 0x338   : > { %3538 = vpow2.f32 %v1618_v49  ;;  %v1604_v52 = vsub.f32 %v4087_v51, %v1578_v50  ;;  %v3300_v49 = vpack.c.bf16 %v3491_v31, %v3490_v45 }
 0x33a   : > { %v4149_v53 = vpop.eup %3534  ;;  %v1620_v54 = vmul.f32 1.442695, %v1604_v52 }
 0x33b   : > { %v1581_v55 = vpop.xlane.xlu0 %1580  ;;  %v1639_v36 = vsel %vm1563_vm7, %v4149_v53, 0.0 }
 0x33c   : > { %3540 = vpow2.f32 %v1620_v54  ;;  %v1605_v41 = vsub.f32 %v4092_v56, %v1581_v55  ;;  %1640 = vadd.xlane.f32.xlu0 %v1639_v36  ;;  %v3496_v55 = vunpack.i.h.bf16 %v4143_v39  ;;  %v3495_v36 = vunpack.i.l.bf16 %v4143_v39 }
 0x33e   : > { %v4154_v57 = vpop.eup %3536  ;;  %v1622_v58 = vmul.f32 1.442695, %v1605_v41 }
 0x33f   : > { %v1584_v46 = vpop.xlane.xlu1 %1583  ;;  %v1642_v59 = vsel %vm1563_vm7, %v4154_v57, 0.0 }
 0x340   : > { %3542 = vpow2.f32 %v1622_v58  ;;  %v1606_v51 = vsub.f32 %v4097_v61, %v1584_v46  ;;  %1643 = vadd.xlane.f32.xlu1 %v1642_v59  ;;  %v3304_v59 = vpack.c.bf16 %v3496_v55, %v3495_v36 }
 0x342   : > { %v4159_v60 = vpop.eup %3538  ;;  %v1624_v62 = vmul.f32 1.442695, %v1606_v51 }
 0x343   : > { %v1587_v63 = vpop.xlane.xlu0 %1586  ;;  %v1645_v2 = vsel %vm1563_vm7, %v4159_v60, 0.0 }
 0x344   : > { %3544 = vpow2.f32 %v1624_v62  ;;  %v1607_v56 = vsub.f32 %v4102_v4, %v1587_v63  ;;  %1646 = vadd.xlane.f32.xlu0 %v1645_v2 }
 0x346   : > { %v4164_v3 = vpop.eup %3540  ;;  %v1626_v5 = vmul.f32 1.442695, %v1607_v56 }
 0x347   : > { %v1590_v6 = vpop.xlane.xlu1 %1589  ;;  %v1648_v7 = vsel %vm1563_vm7, %v4164_v3, 0.0 }
 0x348   : > { %3546 = vpow2.f32 %v1626_v5  ;;  %v1608_v61 = vsub.f32 %v4107_v9, %v1590_v6  ;;  %1649 = vadd.xlane.f32.xlu1 %v1648_v7 }
 0x34a   : > { %v4169_v8 = vpop.eup %3542  ;;  %v1628_v10 = vmul.f32 1.442695, %v1608_v61 }
 0x34b   : > { %v1593_v11 = vpop.xlane.xlu0 %1592  ;;  %v1651_v12 = vsel %vm1563_vm7, %v4169_v8, 0.0 }
 0x34c   : > { %3548 = vpow2.f32 %v1628_v10  ;;  %v1609_v4 = vsub.f32 %v4112_v16, %v1593_v11  ;;  %1652 = vadd.xlane.f32.xlu0 %v1651_v12 }
 0x34e   : > { %v4174_v15 = vpop.eup %3544  ;;  %v1630_v17 = vmul.f32 1.442695, %v1609_v4 }
 0x34f   : > { %v1596_v21 = vpop.xlane.xlu1 %1595  ;;  %v1654_v22 = vsel %vm1563_vm7, %v4174_v15, 0.0 }
 0x350   : > { %3550 = vpow2.f32 %v1630_v17  ;;  %v1610_v9 = vsub.f32 %v4117_v24, %v1596_v21  ;;  %1655 = vadd.xlane.f32.xlu1 %v1654_v22 }
 0x352   : > { %v4179_v23 = vpop.eup %3546  ;;  %v1632_v26 = vmul.f32 1.442695, %v1610_v9 }
 0x353   : > { %v1599_v18 = vpop.xlane.xlu0 %1598  ;;  %v1657_v28 = vsel %vm1563_vm7, %v4179_v23, 0.0  ;;  %v3504_v42 = vpop.permute.xlu1 %3503 }
 0x354   : > { %3552 = vpow2.f32 %v1632_v26  ;;  %v1611_v16 = vsub.f32 %v4122_v30, %v1599_v18  ;;  %1658 = vadd.xlane.f32.xlu0 %v1657_v28  ;;  %v3506_v5 = vunpack.i.h.bf16 %v3504_v42  ;;  %v3505_v6 = vunpack.i.l.bf16 %v3504_v42 }
 0x356   : > { %v4184_v29 = vpop.eup %3548  ;;  %v1634_v32 = vmul.f32 1.442695, %v1611_v16 }
 0x357   : > { %v1660_v33 = vsel %vm1563_vm7, %v4184_v29, 0.0  ;;  %v4204_v43 = vpop.permute.xlu1 %3513 }
 0x358   : > { %3554 = vpow2.f32 %v1634_v32  ;;  %1661 = vadd.xlane.f32.xlu1 %v1660_v33  ;;  %v3515_v17 = vunpack.i.l.bf16 %v4204_v43 }
 0x35a   : > { %v4188_v24 = vpop.eup %3550 }
 0x35b   : > { %v1663_v27 = vsel %vm1563_vm7, %v4188_v24, 0.0 }
 0x35c   : > { %1664 = vadd.xlane.f32.xlu0 %v1663_v27 }
 0x35e   : > { %v4192_v34 = vpop.eup %3552 }
 0x35f   : > { %v1666_v30 = vsel %vm1563_vm7, %v4192_v34, 0.0 }
 0x360   : > { %1667 = vadd.xlane.f32.xlu1 %v1666_v30 }
 0x362   : > { %v4196_v37 = vpop.eup %3554 }
 0x363   : > { %v1669_v40 = vsel %vm1563_vm7, %v4196_v37, 0.0 }
 0x364   : > { %1670 = vadd.xlane.f32.xlu0 %v1669_v40 }
 0x371   : > { %3523 = vrot.lane.b32.xlu1 %v3952_v19, %s4387_s13 }
 0x37a   : > { %3528 = vrot.lane.b32.xlu0 %v3952_v19, %s4388_s22  ;;  %v3499_v19 = vpop.permute.xlu0 %3498 }
 0x37b   : > { %v3501_v39 = vunpack.i.h.bf16 %v3499_v19  ;;  %v3500_v2 = vunpack.i.l.bf16 %v3499_v19 }
 0x37d   : > { %v3312_v7 = vpack.c.bf16 %v3501_v39, %v3500_v2 }
 0x37e   : > { %v3509_v50 = vpop.permute.xlu0 %3508 }
 0x37f   : > { %v3510_v10 = vunpack.i.l.bf16 %v3509_v50 }
 0x382   : > { %v4215_v52 = vpop.permute.xlu0 %3518 }
 0x383   : > { %v3521_v18 = vunpack.i.h.bf16 %v4215_v52  ;;  %v3520_v28 = vunpack.i.l.bf16 %v4215_v52 }
 0x385   : > { %v3328_v33 = vpack.c.bf16 %v3521_v18, %v3520_v28 }
 0x388   : > { %v1638_v44 = vpop.xlane.xlu1 %1637 }
 0x389   : > { %3556 = vrcp.f32 %v1638_v44 }
 0x393   : > { %v3557_v47 = vpop.eup %3556 }
 0x394   : > { %v1684_v48 = vmul.f32 %v3557_v47, %v4137_v35 }
 0x396   : > { %3122 = vmatmul.mubr.msk.f32.vlgmr.msra.gmra.mrb[14].mxu0 %vm1563_vm7, %v1684_v48 }
 0x397   : > { %3302 = vmatpush3.bf16.msk.msra.mxu0 %vm4043_vm6, %v3300_v49  ;;  %3135 = vmatprep.mubr.msk.f32.mxu0 %vm3716_vm0, %v3715_v1 }
 0x398   : > { %3307 = vmatprep.subr.bf16.mxu0 %v3714_v0 }
 0x3c9   : > { %v1641_v54 = vpop.xlane.xlu0 %1640 }
 0x3ca   : > { %3558 = vrcp.f32 %v1641_v54 }
 0x3cd   : > { %v1644_v38 = vpop.xlane.xlu1 %1643 }
 0x3ce   : > { %3560 = vrcp.f32 %v1644_v38 }
 0x3d1   : > { %v1647_v35 = vpop.xlane.xlu0 %1646 }
 0x3d2   : > { %3562 = vrcp.f32 %v1647_v35 }
 0x3d4   : > { %v3559_v41 = vpop.eup %3558 }
 0x3d5   : > { %v1685_v58 = vmul.f32 %v3559_v41, %v4149_v53  ;;  %v1650_v46 = vpop.xlane.xlu1 %1649 }
 0x3d6   : > { %3564 = vrcp.f32 %v1650_v46 }
 0x3d7   : > { %3129 = vmatmul.mubr.msk.f32.vlgmr.msra.gmra.mrb[16].mxu1 %vm1563_vm7, %v1685_v58 }
 0x3d8   : > { %v3561_v51 = vpop.eup %3560  ;;  %3306 = vmatpush3.bf16.msk.msra.mxu1 %vm4043_vm6, %v3304_v59  ;;  %3142 = vmatprep.mubr.msk.f32.mxu1 %vm3716_vm0, %v3715_v1 }
 0x3d9   : > { %v1686_v62 = vmul.f32 %v3561_v51, %v4154_v57  ;;  %v1653_v63 = vpop.xlane.xlu0 %1652  ;;  %3311 = vmatprep.subr.bf16.mxu1 %v3714_v0 }
 0x3da   : > { %3566 = vrcp.f32 %v1653_v63 }
 0x3db   : > { %3136 = vmatmul.mubr.msk.f32.vlgmr.msra.gmra.mrb[16].mxu0 %vm1563_vm7, %v1686_v62 }
 0x3dc   : > { %v3563_v53 = vpop.eup %3562  ;;  %3310 = vmatpush3.bf16.msk.msra.mxu0 %vm4043_vm6, %v3308_v20  ;;  %3149 = vmatprep.mubr.msk.f32.mxu0 %vm3716_vm0, %v3715_v1  ;;  %v3316_v20 = vpack.c.bf16 %v3506_v5, %v3505_v6 }
 0x3dd   : > { %v1687_v57 = vmul.f32 %v3563_v53, %v4159_v60  ;;  %v1656_v56 = vpop.xlane.xlu1 %1655  ;;  %3315 = vmatprep.subr.bf16.mxu0 %v3714_v0  ;;  %v3511_v60 = vunpack.i.h.bf16 %v3509_v50 }
 0x3de   : > { %3568 = vrcp.f32 %v1656_v56 }
 0x3df   : > { %3143 = vmatmul.mubr.msk.f32.vlgmr.msra.gmra.mrb[18].mxu1 %vm1563_vm7, %v1687_v57  ;;  %v3320_v21 = vpack.c.bf16 %v3511_v60, %v3510_v10 }
 0x3e0   : > { %v3565_v61 = vpop.eup %3564  ;;  %3314 = vmatpush3.bf16.msk.msra.mxu1 %vm4043_vm6, %v3312_v7  ;;  %3156 = vmatprep.mubr.msk.f32.mxu1 %vm3716_vm0, %v3715_v1 }
 0x3e1   : > { %v1688_v13 = vmul.f32 %v3565_v61, %v4164_v3  ;;  %v1659_v14 = vpop.xlane.xlu0 %1658  ;;  %3319 = vmatprep.subr.bf16.mxu1 %v3714_v0  ;;  %v3516_v3 = vunpack.i.h.bf16 %v4204_v43 }
 0x3e2   : > { %3570 = vrcp.f32 %v1659_v14 }
 0x3e3   : > { %3150 = vmatmul.mubr.msk.f32.vlgmr.msra.gmra.mrb[18].mxu0 %vm1563_vm7, %v1688_v13  ;;  %v3324_v26 = vpack.c.bf16 %v3516_v3, %v3515_v17 }
 0x3e4   : > { %v3567_v11 = vpop.eup %3566  ;;  %3318 = vmatpush3.bf16.msk.msra.mxu0 %vm4043_vm6, %v3316_v20  ;;  %3163 = vmatprep.mubr.msk.f32.mxu0 %vm3716_vm0, %v3715_v1 }
 0x3e5   : > { %v1689_v12 = vmul.f32 %v3567_v11, %v4169_v8  ;;  %v1662_v4 = vpop.xlane.xlu1 %1661  ;;  %3323 = vmatprep.subr.bf16.mxu0 %v3714_v0 }
 0x3e6   : > { %3572 = vrcp.f32 %v1662_v4 }
 0x3e7   : > { %3157 = vmatmul.mubr.msk.f32.vlgmr.msra.gmra.mrb[20].mxu1 %vm1563_vm7, %v1689_v12 }
 0x3e8   : > { %v3569_v22 = vpop.eup %3568  ;;  %3322 = vmatpush3.bf16.msk.msra.mxu1 %vm4043_vm6, %v3320_v21  ;;  %3170 = vmatprep.mubr.msk.f32.mxu1 %vm3716_vm0, %v3715_v1 }
 0x3e9   : > { %v1690_v8 = vmul.f32 %v3569_v22, %v4174_v15  ;;  %v1665_v9 = vpop.xlane.xlu0 %1664  ;;  %3327 = vmatprep.subr.bf16.mxu1 %v3714_v0 }
 0x3ea   : > { %3574 = vrcp.f32 %v1665_v9 }
 0x3eb   : > { %3164 = vmatmul.mubr.msk.f32.vlgmr.msra.gmra.mrb[20].mxu0 %vm1563_vm7, %v1690_v8 }
 0x3ec   : > { %v3571_v16 = vpop.eup %3570  ;;  %3326 = vmatpush3.bf16.msk.msra.mxu0 %vm4043_vm6, %v3324_v26  ;;  %3177 = vmatprep.mubr.msk.f32.mxu0 %vm3716_vm0, %v3715_v1 }
 0x3ed   : > { %v1691_v15 = vmul.f32 %v3571_v16, %v4179_v23  ;;  %v1668_v32 = vpop.xlane.xlu1 %1667  ;;  %3331 = vmatprep.subr.bf16.mxu0 %v3714_v0 }
 0x3ee   : > { %3576 = vrcp.f32 %v1668_v32 }
 0x3ef   : > { %3171 = vmatmul.mubr.msk.f32.vlgmr.msra.gmra.mrb[22].mxu1 %vm1563_vm7, %v1691_v15 }
 0x3f0   : > { %v3573_v27 = vpop.eup %3572  ;;  %3330 = vmatpush3.bf16.msk.msra.mxu1 %vm4043_vm6, %v3328_v33  ;;  %3184 = vmatprep.mubr.msk.f32.mxu1 %vm3716_vm0, %v3715_v1 }
 0x3f1   : > { %v1692_v30 = vmul.f32 %v3573_v27, %v4184_v29  ;;  %v1671_v40 = vpop.xlane.xlu0 %1670  ;;  %v3524_v42 = vpop.permute.xlu1 %3523  ;;  %3335 = vmatprep.subr.bf16.mxu1 %v3714_v0 }
 0x3f2   : > { %3578 = vrcp.f32 %v1671_v40  ;;  %v3526_v23 = vunpack.i.h.bf16 %v3524_v42  ;;  %v3525_v43 = vunpack.i.l.bf16 %v3524_v42 }
 0x3f3   : > { %3178 = vmatmul.mubr.msk.f32.vlgmr.msra.gmra.mrb[22].mxu0 %vm1563_vm7, %v1692_v30 }
 0x3f4   : > { %v3575_v44 = vpop.eup %3574  ;;  %v3332_v31 = vpack.c.bf16 %v3526_v23, %v3525_v43  ;;  %3191 = vmatprep.mubr.msk.f32.mxu0 %vm3716_vm0, %v3715_v1 }
 0x3f5   : > { %v1693_v45 = vmul.f32 %v3575_v44, %v4188_v24  ;;  %v3529_v47 = vpop.permute.xlu0 %3528 }
 0x3f6   : > { %v3531_v48 = vunpack.i.h.bf16 %v3529_v47  ;;  %v3530_v49 = vunpack.i.l.bf16 %v3529_v47  ;;  %3334 = vmatpush3.bf16.msk.msra.mxu0 %vm4043_vm6, %v3332_v31 }
 0x3f7   : > { %3185 = vmatmul.mubr.msk.f32.vlgmr.msra.gmra.mrb[24].mxu1 %vm1563_vm7, %v1693_v45 }
 0x3f8   : > { %v3577_v0 = vpop.eup %3576  ;;  %v3336_v29 = vpack.c.bf16 %v3531_v48, %v3530_v49  ;;  %3198 = vmatprep.mubr.msk.f32.mxu1 %vm3716_vm0, %v3715_v1  ;;  %vm2715_vm0 = vcmask 654336  }
 0x3f9   : > { %v1694_v19 = vmul.f32 %v3577_v0, %v4192_v34 }
 0x3fa   : > { %3338 = vmatpush3.bf16.msk.msra.mxu1 %vm4043_vm6, %v3336_v29 }
 0x3fb   : > { %3192 = vmatmul.mubr.msk.f32.vlgmr.msra.gmra.mrb[24].mxu0 %vm1563_vm7, %v1694_v19 }
 0x3fc   : > { %v3579_v24 = vpop.eup %3578 }
 0x3fd   : > { %v1695_v50 = vmul.f32 %v3579_v24, %v4196_v37 }
 0x3ff   : > { %3199 = vmatmul.mubr.msk.f32.vlgmr.msra.gmra.mrb[26].mxu1 %vm1563_vm7, %v1695_v50 }
 0x469   : > { %v1773_v52 = vpop.f32.mrb[14].mxu0 }
 0x46a   : > { %v3123_v54 = vpop.f32.mrb[15].mxu0 }
 0x4aa   : > { %v1853_v38 = vpop.f32.mrb[16].mxu1 }
 0x4ab   : > { %v3130_v35 = vpop.f32.mrb[17].mxu1  ;;  %2655 = vrot.lane.b32.xlu1 %v1853_v38, %s3731_s21  ;;  %s2847_s21 = sshll.u32 %s325_s18, 3 }
 0x4ae   : > { %v1933_v55 = vpop.f32.mrb[16].mxu0 }
 0x4af   : > { %2659 = vrot.lane.b32.xlu0 %v1933_v55, %s3730_s23  ;;  %v3137_v1 = vpop.f32.mrb[17].mxu0  ;;  %s327_s23 = scalar_lea.vmem [#allocation7], %s2847_s21 }
 0x4b0   : > { %s2734_s29 = sshll.u32 %s327_s23, 4  ;;  %s4312_s29 = int_to_ptr.vmem [resolvable:$true] %s2734_s29 }
 0x4b2   : > { %v2013_v34 = vpop.f32.mrb[18].mxu1 }
 0x4b3   : > { %v3144_v25 = vpop.f32.mrb[19].mxu1  ;;  %2663 = vrot.lane.b32.xlu1 %v2013_v34, %s3728_s10  ;;  %s3636_s10 = scalar_lea.vmem %s4312_s29, 128 }
 0x4b4   : > { %p3637_p10 = scmp.ne.s32.totalorder %s4312_s29, %s3636_s10 }
 0x4b6   : > { %v2089_v36 = vpop.f32.mrb[18].mxu0  ;;  %p3638_p2 = pnand %p3637_p10, %p4392_p1 }
 0x4b7   : > { %2667 = vrot.lane.b32.xlu0 %v2089_v36, %s3729_s14  ;;  %v3151_v37 = vpop.f32.mrb[19].mxu0  ;;  %s3733_s14 = smov [#allocation7]  }
 0x4b8   : > { %p3639_p3 = pneg %p3638_p2 }
 0x4ba   : > { %v2170_v41 = vpop.f32.mrb[20].mxu1 }
 0x4bb   : > { %v3158_v58 = vpop.f32.mrb[21].mxu1  ;;  %2671 = vrot.lane.b32.xlu1 %v2170_v41, %s3727_s15 }
 0x4be   : > { %v2250_v46 = vpop.f32.mrb[20].mxu0 }
 0x4bf   : > { %2675 = vrot.lane.b32.xlu0 %v2250_v46, %s4389_s17  ;;  %v3165_v59 = vpop.f32.mrb[21].mxu0 }
 0x4c2   : > { %v2330_v51 = vpop.f32.mrb[22].mxu1 }
 0x4c3   : > { %v3172_v62 = vpop.f32.mrb[23].mxu1  ;;  %2679 = vrot.lane.b32.xlu1 %v2330_v51, %s4390_s19 }
 0x4c6   : > { %v2410_v63 = vpop.f32.mrb[22].mxu0 }
 0x4c7   : > { %2683 = vrot.lane.b32.xlu0 %v2410_v63, %s4391_s16  ;;  %v3179_v39 = vpop.f32.mrb[23].mxu0 }
 0x4ca   : > { %v2490_v2 = vpop.f32.mrb[24].mxu1 }
 0x4cb   : > { %v3186_v53 = vpop.f32.mrb[25].mxu1  ;;  %2687 = vrot.lane.b32.xlu1 %v2490_v2, %s4388_s22 }
 0x4ce   : > { %v2570_v57 = vpop.f32.mrb[24].mxu0 }
 0x4cf   : > { %2691 = vrot.lane.b32.xlu0 %v2570_v57, %s4387_s13  ;;  %v3193_v56 = vpop.f32.mrb[25].mxu0  ;;  %s3640_s13 = sshll.u32 %s3733_s14, 4  ;;  %s3641_s13 = int_to_ptr.vmem [resolvable:$false] %s3640_s13 }
 0x4d0   : > { %s3642_s22 = scalar_lea.vmem %s3641_s13, 256  ;;  %p3643_p4 = scmp.lt.s32.totalorder %s4312_s29, %s3641_s13 }
 0x4d1   : > { %p3644_p7 = scmp.lt.s32.totalorder %s3642_s22, %s3636_s10 }
 0x4d2   : > { %v2650_v5 = vpop.f32.mrb[26].mxu1 }
 0x4d3   : > { %v3200_v6 = vpop.f32.mrb[27].mxu1  ;;  %2695 = vrot.lane.b32.xlu1 %v2650_v5, %s3721_s20  ;;  %s2917_s20 = sshll.u32 %s3795_s28, 7  ;;  %s2721_s28 = scalar_lea.sflag [#allocation4], %s325_s18 }
 0x4d4   : > { %s4310_s15 = scalar_lea.hbm %s4362_s7, %s2917_s20  ;;  %p3645_p8 = por %p3644_p7, %p3643_p4 }
 0x4d6   : > { %p3646_p11 = pnand %p3645_p8, %p3639_p3 }
 0x51d   : > { %v2656_v7 = vpop.permute.xlu1 %2655 }
 0x51e   : > { %v2698_v10 = vsel %vm556_vm2, %v1773_v52, %v2656_v7  ;;  %vm2717_vm2 = vcmask 719872  }
 0x521   : > { %v2660_v61 = vpop.permute.xlu0 %2659 }
 0x522   : > { %v2700_v11 = vsel %vm2699_vm8, %v2698_v10, %v2660_v61 }
 0x525   : > { %v2664_v13 = vpop.permute.xlu1 %2663 }
 0x526   : > { %v2702_v4 = vsel %vm2701_vm9, %v2700_v11, %v2664_v13 }
 0x529   : > { %v2668_v14 = vpop.permute.xlu0 %2667 }
 0x52a   : > { %v2704_v17 = vsel %vm2703_vm10, %v2702_v4, %v2668_v14 }
 0x52d   : > { %v2672_v20 = vpop.permute.xlu1 %2671 }
 0x52e   : > { %v2706_v21 = vsel %vm2705_vm11, %v2704_v17, %v2672_v20 }
 0x531   : > { %v2676_v60 = vpop.permute.xlu0 %2675 }
 0x532   : > { %v2708_v22 = vsel %vm2707_vm12, %v2706_v21, %v2676_v60 }
 0x535   : > { %v2680_v12 = vpop.permute.xlu1 %2679 }
 0x536   : > { %v2710_v9 = vsel %vm2709_vm13, %v2708_v22, %v2680_v12 }
 0x539   : > { %v2684_v3 = vpop.permute.xlu0 %2683 }
 0x53a   : > { %v2712_v18 = vsel %vm2711_vm14, %v2710_v9, %v2684_v3 }
 0x53d   : > { %v2688_v8 = vpop.permute.xlu1 %2687 }
 0x53e   : > { %v2714_v28 = vsel %vm2713_vm15, %v2712_v18, %v2688_v8 }
 0x541   : > { %v2692_v26 = vpop.permute.xlu0 %2691 }
 0x542   : > { %v2716_v16 = vsel %vm2715_vm0, %v2714_v28, %v2692_v26 }
 0x545   : > { %v2696_v15 = vpop.permute.xlu1 %2695 }
 0x546   : > { %v2718_v32 = vsel %vm2717_vm2, %v2716_v16, %v2696_v15 }
 0x547   : > { %2719 = vst.msk [vmem:[%s327_s23] sm:$0xff] %vm363_vm1, %v2718_v32 }
 0x548   : > { %3649 = shalt.err (!%p3646_p11)
}
 0x549   : > { %s3650_s17 = scalar_lea.hbm %s4310_s15, 128  ;;  %s3654_s18 = scalar_lea.hbm %s4362_s7, 256 }
 0x54a   : > { %p3651_p13 = scmp.ne.s32.totalorder %s4310_s15, %s3650_s17  ;;  %p3655_p6 = scmp.lt.u32.totalorder %s4310_s15, %s4362_s7 }
 0x54b   : > { %p3656_p9 = scmp.lt.u32.totalorder %s3654_s18, %s3650_s17  ;;  %p3658_p10 = scmp.lt.u32.totalorder %s3650_s17, %s4310_s15 }
 0x54c   : > { %p3652_p0 = pnand %p3651_p13, %p4392_p1 }
 0x54d   : > { %p3657_p12 = por %p3656_p9, %p3655_p6 }
 0x54e   : > { %p3653_p5 = pneg %p3652_p0 }
 0x54f   : > { %p3659_p2 = por %p3658_p10, %p3657_p12 }
 0x551   : > { %p3660_p3 = pnand %p3659_p2, %p3653_p5 }
 0x553   : > { %3663 = shalt.err (!%p3660_p3)
}
 0x554   : > { %3347 = dma.vmem_to_hbm [thread:$0]  (%p4392_p1), %s4312_s29, 128, %s4310_s15, %s2721_s28  }
 0x555 PF: > { %p3364_p4 = scmp.ge.s32.totalorder %s3706_s27, 2  ;;  %s2746_s23 = sand.u32 1, %s3694_s24  }
 0x556   : > { %p4393_p7 = scmp.ne.s32.totalorder %s4375_s12, 0  ;;  %s2747_s8 = scalar_lea.sflag [#allocation4], %s2746_s23 }
 0x558   : > { %p3357_p8 = pnand %p3364_p4, %p4393_p7 }
 0x55a   : > { %3689 = dma.done.wait (!%p3357_p8), %s2747_s8, 128  }
 0x55b   : > { %3691 = vsyncadd (!%p3357_p8), %s2747_s8, 4294967168  ;;  %s4394_s9 = sld [smem:[#allocation11_spill]]  ;;  %p19_p11 = scmp.ge.s32.totalorder %s3799_s30, 4  }
 0x55c   : > { %s4395_s24 = smov %s3698_s25  ;;  %s4396_s25 = smov %s3702_s26 }
 0x55d   : > { %s4398_s27 = smov %s3799_s30  ;;  %21 = sbr.rel (!%p19_p11) target bundleno = 5 (0x5), region = 98 }
 0x561   : > { %s4397_s26 = smov %s4394_s9 }
 0x564   :  { %2752 = vsyncpa [#allocation3], 1 }
 0x565   :  { %2754 = vsyncpa [#allocation3 + $0x1], 1 }
 0x566   :  { %2755 = vsyncpa [#allocation6], 1 }
 0x567   :  { %2756 = vsyncpa [#allocation4], 1 }
 0x568   :  { %2758 = vsyncpa [#allocation4 + $0x1], 1 }

</bundles_post_ra>
